<compile_context>
chip_gen: v7x
topology: tpu7x:2x2x1
jax: 0.10.0
libtpu: 0.0.40
codegen_flags: <defaults>
</compile_context>

<pallas_src>
import functools

import jax
import jax.numpy as jnp
from jax.experimental import pallas as pl
from jax.experimental.pallas import tpu as pltpu


def _critic_kernel(x_ref, a_ref, w1x_ref, w1a_ref, b1_ref, w2_ref, b2_ref,
                   w3_ref, b3_ref, out_ref):
    # Layer 1: two small bf16 dots replace cat([x, a]) @ w1 (same MXU work).
    h1 = jnp.dot(x_ref[...], w1x_ref[...], preferred_element_type=jnp.float32)
    h1 = h1 + jnp.dot(a_ref[...], w1a_ref[...], preferred_element_type=jnp.float32)
    h1 = jnp.maximum(h1 + b1_ref[...], 0.0)            # f32 bias + ReLU (v5e-safe)

    # Layer 2: (TB, 256) @ (256, 256), bf16 operands, f32 accumulation.
    h2 = jnp.dot(h1.astype(jnp.bfloat16), w2_ref[...],
                 preferred_element_type=jnp.float32)
    h2 = jnp.maximum(h2 + b2_ref[...], 0.0)

    # Layer 3: N=1 matmul would waste the MXU -> VPU multiply against the
    # (1, 256) w3 row and reduce over the lane axis on the XLU.
    q = jnp.sum(h2 * w3_ref[...], axis=-1, keepdims=True) + b3_ref[0]
    out_ref[...] = q.astype(out_ref.dtype)


@functools.partial(jax.jit, static_argnames=("block_b",))
def critic_forward(x, a, params, block_b=256):
    """Pallas forward pass of the Critic.

    x: (B, state_dim) float32
    a: (B, action_dim) float32
    params: dict with w1 (D,256), b1 (256,), w2 (256,256), b2 (256,),
            w3 (256,1), b3 (1,)
    returns: (B, 1) float32
    """
    B, Sd = x.shape
    _, Ad = a.shape
    H = params["w1"].shape[1]

    # v7x has 2 TensorCores: keep >= 2 grid steps when the batch allows it, so
    # the "parallel" grid axis can be sharded across both cores.
    if B > 128 and pl.cdiv(B, block_b) < 2:
        block_b = max(128, pl.cdiv(pl.cdiv(B, 2), 128) * 128)

    padded_B = pl.cdiv(B, block_b) * block_b
    pad = padded_B - B

    # MXU operands in bf16 (f32 accumulation inside the kernel).
    x_in = x.astype(jnp.bfloat16)
    a_in = a.astype(jnp.bfloat16)
    if pad:
        x_in = jnp.pad(x_in, ((0, pad), (0, 0)))
        a_in = jnp.pad(a_in, ((0, pad), (0, 0)))

    w1 = params["w1"].astype(jnp.bfloat16)
    w1x = w1[:Sd]                                   # (Sd, H)
    w1a = w1[Sd:]                                   # (Ad, H)
    w2 = params["w2"].astype(jnp.bfloat16)          # (H, H)
    b1 = params["b1"].reshape(1, H).astype(jnp.float32)
    b2 = params["b2"].reshape(1, H).astype(jnp.float32)
    w3 = params["w3"].reshape(1, H).astype(jnp.float32)   # lane row for the reduction
    b3 = params["b3"].reshape(1).astype(jnp.float32)       # scalar, lives in SMEM

    grid = (padded_B // block_b,)

    out = pl.pallas_call(
        _critic_kernel,
        out_shape=jax.ShapeDtypeStruct((padded_B, 1), jnp.float32),
        grid_spec=pltpu.PrefetchScalarGridSpec(
            num_scalar_prefetch=0,
            grid=grid,
            in_specs=[
                pl.BlockSpec((block_b, Sd), lambda i: (i, 0)),   # x batch tile (bf16)
                pl.BlockSpec((block_b, Ad), lambda i: (i, 0)),   # a batch tile (bf16)
                pl.BlockSpec((Sd, H), lambda i: (0, 0)),         # w1[:Sd]  (resident)
                pl.BlockSpec((Ad, H), lambda i: (0, 0)),         # w1[Sd:]  (resident)
                pl.BlockSpec((1, H), lambda i: (0, 0)),          # b1
                pl.BlockSpec((H, H), lambda i: (0, 0)),          # w2       (resident)
                pl.BlockSpec((1, H), lambda i: (0, 0)),          # b2
                pl.BlockSpec((1, H), lambda i: (0, 0)),          # w3 row (f32, VPU path)
                pl.BlockSpec(memory_space=pltpu.MemorySpace.SMEM),  # b3 scalar
            ],
            out_specs=pl.BlockSpec((block_b, 1), lambda i: (i, 0)),
        ),
        compiler_params=pltpu.CompilerParams(
            dimension_semantics=("parallel",),
        ),
    )(x_in, a_in, w1x, w1a, b1, w2, b2, w3, b3)

    return out[:B]


def init_critic_params(key, state_dim, action_dim, hidden=256):
    """Deterministic init mirroring nn.Linear default (uniform +/- 1/sqrt(fan_in))."""
    d_in = state_dim + action_dim
    keys = jax.random.split(key, 6)

    def lin(kw, kb, fan_in, fan_out):
        bound = 1.0 / jnp.sqrt(jnp.float32(fan_in))
        w = jax.random.uniform(kw, (fan_in, fan_out), jnp.float32, -bound, bound)
        b = jax.random.uniform(kb, (fan_out,), jnp.float32, -bound, bound)
        return w, b

    w1, b1 = lin(keys[0], keys[1], d_in, hidden)
    w2, b2 = lin(keys[2], keys[3], hidden, hidden)
    w3, b3 = lin(keys[4], keys[5], hidden, 1)
    return {"w1": w1, "b1": b1, "w2": w2, "b2": b2, "w3": w3, "b3": b3}


def critic_forward_ref(x, a, params):
    """Pure-JAX f32 reference for correctness checking."""
    xa = jnp.concatenate([x, a], axis=1)
    h1 = jnp.maximum(xa @ params["w1"] + params["b1"], 0.0)
    h2 = jnp.maximum(h1 @ params["w2"] + params["b2"], 0.0)
    return h2 @ params["w3"] + params["b3"]


if __name__ == "__main__":
    key = jax.random.PRNGKey(0)
    k_param, k_x, k_a, k_x2, k_a2 = jax.random.split(key, 5)

    state_dim = 16
    action_dim = 8
    params = init_critic_params(k_param, state_dim, action_dim)

    # bf16 MXU inputs with f32 accumulation -> loosen the allclose tolerance
    # relative to the pure-f32 reference.
    ATOL = 5e-2
    RTOL = 5e-2

    # Small single-tile case (exercises batch padding + slice-off).
    b1 = 64
    x1 = jax.random.normal(k_x, (b1, state_dim), jnp.float32)
    a1 = jax.random.normal(k_a, (b1, action_dim), jnp.float32)
    q1 = jax.block_until_ready(critic_forward(x1, a1, params))
    q1_ref = critic_forward_ref(x1, a1, params)
    assert q1.shape == (b1, 1), q1.shape
    assert jnp.allclose(q1, q1_ref, atol=ATOL, rtol=RTOL), "mismatch vs reference (B=64)"

    # Multi-tile case (grid of 2 parallel steps + padding).
    b2 = 333
    x2 = jax.random.normal(k_x2, (b2, state_dim), jnp.float32)
    a2 = jax.random.normal(k_a2, (b2, action_dim), jnp.float32)
    q2 = jax.block_until_ready(critic_forward(x2, a2, params))
    q2_ref = critic_forward_ref(x2, a2, params)
    assert q2.shape == (b2, 1), q2.shape
    assert jnp.allclose(q2, q2_ref, atol=ATOL, rtol=RTOL), "mismatch vs reference (B=333)"

    print("KERNEL_OK")
</pallas_src>

<mosaic_0001>
module attributes {stable_mosaic.version = 11 : i64} {
  func.func @_critic_kernel(%arg0: i32, %arg1: memref<256x16xbf16, #tpu.memory_space<vmem>>, %arg2: memref<256x8xbf16, #tpu.memory_space<vmem>>, %arg3: memref<16x256xbf16, #tpu.memory_space<vmem>>, %arg4: memref<8x256xbf16, #tpu.memory_space<vmem>>, %arg5: memref<1x256xf32, #tpu.memory_space<vmem>>, %arg6: memref<256x256xbf16, #tpu.memory_space<vmem>>, %arg7: memref<1x256xf32, #tpu.memory_space<vmem>>, %arg8: memref<1x256xf32, #tpu.memory_space<vmem>>, %arg9: memref<1xf32, #tpu.memory_space<smem>>, %arg10: memref<256x1xf32, #tpu.memory_space<vmem>>) attributes {dimension_semantics = [#tpu.dimension_semantics<parallel>], iteration_bounds = array<i64: 1>, scalar_prefetch = 0 : i64, scratch_operands = 0 : i64, tpu.core_type = #tpu.core_type<tc>, window_params = [{transform_indices = @transform_0, window_bounds = array<i64: 256, 16>}, {transform_indices = @transform_1, window_bounds = array<i64: 256, 8>}, {pipeline_mode = #tpu.pipeline_mode<synchronous>, transform_indices = @transform_2, window_bounds = array<i64: 16, 256>}, {pipeline_mode = #tpu.pipeline_mode<synchronous>, transform_indices = @transform_3, window_bounds = array<i64: 8, 256>}, {pipeline_mode = #tpu.pipeline_mode<synchronous>, transform_indices = @transform_4, window_bounds = array<i64: 1, 256>}, {pipeline_mode = #tpu.pipeline_mode<synchronous>, transform_indices = @transform_5, window_bounds = array<i64: 256, 256>}, {pipeline_mode = #tpu.pipeline_mode<synchronous>, transform_indices = @transform_6, window_bounds = array<i64: 1, 256>}, {pipeline_mode = #tpu.pipeline_mode<synchronous>, transform_indices = @transform_7, window_bounds = array<i64: 1, 256>}, {transform_indices = @transform_8, window_bounds = array<i64: 1>}, {transform_indices = @transform_9, window_bounds = array<i64: 256, 1>}]} {
    %c0 = arith.constant 0 : index
    %c0_0 = arith.constant 0 : index
    %0 = vector.load %arg1[%c0, %c0_0] : memref<256x16xbf16, #tpu.memory_space<vmem>>, vector<256x16xbf16>
    %c0_1 = arith.constant 0 : index
    %c0_2 = arith.constant 0 : index
    %1 = vector.load %arg3[%c0_1, %c0_2] : memref<16x256xbf16, #tpu.memory_space<vmem>>, vector<16x256xbf16>
    %cst = arith.constant dense<0.000000e+00> : vector<256x256xf32>
    %2 = tpu.matmul %0, %1, %cst {dimension_numbers = #tpu.dot_dimension_numbers<[1], [0], [0], [1], [0, 0, 1, 1], [], []>} : vector<256x16xbf16>, vector<16x256xbf16>, vector<256x256xf32> -> vector<256x256xf32>
    %c0_3 = arith.constant 0 : index
    %c0_4 = arith.constant 0 : index
    %3 = vector.load %arg2[%c0_3, %c0_4] : memref<256x8xbf16, #tpu.memory_space<vmem>>, vector<256x8xbf16>
    %c0_5 = arith.constant 0 : index
    %c0_6 = arith.constant 0 : index
    %4 = vector.load %arg4[%c0_5, %c0_6] : memref<8x256xbf16, #tpu.memory_space<vmem>>, vector<8x256xbf16>
    %cst_7 = arith.constant dense<0.000000e+00> : vector<256x256xf32>
    %5 = tpu.matmul %3, %4, %cst_7 {dimension_numbers = #tpu.dot_dimension_numbers<[1], [0], [0], [1], [0, 0, 1, 1], [], []>} : vector<256x8xbf16>, vector<8x256xbf16>, vector<256x256xf32> -> vector<256x256xf32>
    %6 = arith.addf %2, %5 : vector<256x256xf32>
    %c0_8 = arith.constant 0 : index
    %c0_9 = arith.constant 0 : index
    %7 = vector.load %arg5[%c0_8, %c0_9] : memref<1x256xf32, #tpu.memory_space<vmem>>, vector<1x256xf32>
    %8 = vector.broadcast %7 : vector<1x256xf32> to vector<256x256xf32>
    %9 = arith.addf %6, %8 : vector<256x256xf32>
    %cst_10 = arith.constant 0.000000e+00 : f32
    %10 = vector.broadcast %cst_10 : f32 to vector<256x256xf32>
    %11 = arith.maximumf %9, %10 : vector<256x256xf32>
    %12 = arith.truncf %11 : vector<256x256xf32> to vector<256x256xbf16>
    %c0_11 = arith.constant 0 : index
    %c0_12 = arith.constant 0 : index
    %13 = vector.load %arg6[%c0_11, %c0_12] : memref<256x256xbf16, #tpu.memory_space<vmem>>, vector<256x256xbf16>
    %cst_13 = arith.constant dense<0.000000e+00> : vector<256x256xf32>
    %14 = tpu.matmul %12, %13, %cst_13 {dimension_numbers = #tpu.dot_dimension_numbers<[1], [0], [0], [1], [0, 0, 1, 1], [], []>} : vector<256x256xbf16>, vector<256x256xbf16>, vector<256x256xf32> -> vector<256x256xf32>
    %c0_14 = arith.constant 0 : index
    %c0_15 = arith.constant 0 : index
    %15 = vector.load %arg7[%c0_14, %c0_15] : memref<1x256xf32, #tpu.memory_space<vmem>>, vector<1x256xf32>
    %16 = vector.broadcast %15 : vector<1x256xf32> to vector<256x256xf32>
    %17 = arith.addf %14, %16 : vector<256x256xf32>
    %cst_16 = arith.constant 0.000000e+00 : f32
    %18 = vector.broadcast %cst_16 : f32 to vector<256x256xf32>
    %19 = arith.maximumf %17, %18 : vector<256x256xf32>
    %c0_17 = arith.constant 0 : index
    %c0_18 = arith.constant 0 : index
    %20 = vector.load %arg8[%c0_17, %c0_18] : memref<1x256xf32, #tpu.memory_space<vmem>>, vector<1x256xf32>
    %21 = vector.broadcast %20 : vector<1x256xf32> to vector<256x256xf32>
    %22 = arith.mulf %19, %21 : vector<256x256xf32>
    %cst_19 = arith.constant dense<0.000000e+00> : vector<256xf32>
    %23 = vector.multi_reduction <add>, %22, %cst_19 [1] : vector<256x256xf32> to vector<256xf32>
    %24 = vector.shape_cast %23 : vector<256xf32> to vector<256x1xf32>
    %c0_20 = arith.constant 0 : index
    %25 = memref.load %arg9[%c0_20] : memref<1xf32, #tpu.memory_space<smem>>
    %26 = vector.broadcast %25 : f32 to vector<256x1xf32>
    %27 = arith.addf %24, %26 : vector<256x1xf32>
    %c0_21 = arith.constant 0 : index
    %c0_22 = arith.constant 0 : index
    %28 = vector.load %arg10[%c0_21, %c0_22] : memref<256x1xf32, #tpu.memory_space<vmem>>, vector<256x1xf32>
    tpu.vector_store %arg10[%c0_21, %c0_22], %27 {strides = array<i32>} : memref<256x1xf32, #tpu.memory_space<vmem>>, vector<256x1xf32>,
    return
  }
  func.func @transform_0(%arg0: i32) -> (i32, i32) {
    %c0_i32 = arith.constant 0 : i32
    %c0_i32_0 = arith.constant 0 : i32
    return %arg0, %c0_i32 : i32, i32
  }
  func.func @transform_1(%arg0: i32) -> (i32, i32) {
    %c0_i32 = arith.constant 0 : i32
    %c0_i32_0 = arith.constant 0 : i32
    return %arg0, %c0_i32 : i32, i32
  }
  func.func @transform_2(%arg0: i32) -> (i32, i32) {
    %c0_i32 = arith.constant 0 : i32
    %c0_i32_0 = arith.constant 0 : i32
    %c0_i32_1 = arith.constant 0 : i32
    return %c0_i32, %c0_i32_0 : i32, i32
  }
  func.func @transform_3(%arg0: i32) -> (i32, i32) {
    %c0_i32 = arith.constant 0 : i32
    %c0_i32_0 = arith.constant 0 : i32
    %c0_i32_1 = arith.constant 0 : i32
    return %c0_i32, %c0_i32_0 : i32, i32
  }
  func.func @transform_4(%arg0: i32) -> (i32, i32) {
    %c0_i32 = arith.constant 0 : i32
    %c0_i32_0 = arith.constant 0 : i32
    %c0_i32_1 = arith.constant 0 : i32
    return %c0_i32, %c0_i32_0 : i32, i32
  }
  func.func @transform_5(%arg0: i32) -> (i32, i32) {
    %c0_i32 = arith.constant 0 : i32
    %c0_i32_0 = arith.constant 0 : i32
    %c0_i32_1 = arith.constant 0 : i32
    return %c0_i32, %c0_i32_0 : i32, i32
  }
  func.func @transform_6(%arg0: i32) -> (i32, i32) {
    %c0_i32 = arith.constant 0 : i32
    %c0_i32_0 = arith.constant 0 : i32
    %c0_i32_1 = arith.constant 0 : i32
    return %c0_i32, %c0_i32_0 : i32, i32
  }
  func.func @transform_7(%arg0: i32) -> (i32, i32) {
    %c0_i32 = arith.constant 0 : i32
    %c0_i32_0 = arith.constant 0 : i32
    %c0_i32_1 = arith.constant 0 : i32
    return %c0_i32, %c0_i32_0 : i32, i32
  }
  func.func @transform_8(%arg0: i32) -> i32 {
    %c0_i32 = arith.constant 0 : i32
    %c0_i32_0 = arith.constant 0 : i32
    return %c0_i32 : i32
  }
  func.func @transform_9(%arg0: i32) -> (i32, i32) {
    %c0_i32 = arith.constant 0 : i32
    %c0_i32_0 = arith.constant 0 : i32
    return %arg0, %c0_i32 : i32, i32
  }
}

</mosaic_0001>

<bundles_post_ra>
// kernel: critic_forward.1
= control target key start
LH: loop header
LB: loop body
LE: loop exit
PB: predicated region body
PF: predicated region fallthrough
CT: control target
= control target key end

     0   :  { %vm235_vm0 = vcmask 1043456   ;;  %v1896_v1 = vmov 0   ;;  %vm186_vm1 = vcmask 64512   ;;  %vm525_vm2 = vcmask 130048   ;;  %s2696_s3 = inlined_call_operand.vmem [shape: bf16[8,256], index: 3, kind: input, shape index: {}]   ;;  %s2697_s1 = inlined_call_operand.vmem [shape: bf16[256,8], index: 1, kind: input, shape index: {}]   ;;  %s2698_s2 = inlined_call_operand.vmem [shape: bf16[16,256], index: 2, kind: input, shape index: {}]   ;;  %s2699_s0 = inlined_call_operand.vmem [shape: bf16[256,16], index: 0, kind: input, shape index: {}]   ;;  %s2700_s5 = inlined_call_operand.vmem [shape: bf16[256,256], index: 5, kind: input, shape index: {}]   ;;  %s2701_s4 = inlined_call_operand.vmem [shape: f32[1,256], index: 4, kind: input, shape index: {}]   ;;  %s2702_s6 = inlined_call_operand.vmem [shape: f32[1,256], index: 6, kind: input, shape index: {}]   ;;  %s2703_s7 = inlined_call_operand.vmem [shape: f32[1,256], index: 7, kind: input, shape index: {}]   ;;  %s2704_s8 = inlined_call_operand.<no memory space> [shape: f32[1], index: 8, kind: input, shape index: {}]   ;;  %s2705_s9 = inlined_call_operand.vmem [shape: f32[256,1], index: 9, kind: output, shape index: {}]  }
   0x1   :  { %v100_v0 = vld [vmem:[%s2696_s3] sm:$0xff]  ;;  %274 = vmatprep.mubr.bf16.mxu0 %v1896_v1  ;;  %354 = vmatprep.mubr.bf16.mxu1 %v1896_v1  ;;  %v1817_v8 = vld [vmem:[%s2697_s1 + $0x8] sm:$0xff]   ;;  %v1818_v10 = vld [vmem:[%s2697_s1 + $0x10] sm:$0xff]   ;;  %vm1606_vm3 = vcmask 7168  }
   0x2   :  { %v1660_v2 = vcombine.high %v100_v0, %v100_v0  ;;  %v1659_v3 = vcombine.low %v100_v0, %v100_v0  ;;  %v1816_v4 = vld [vmem:[%s2698_s2 + $0x4] ss:$8 sps:$4 sm:$0xff]   ;;  %v1814_v7 = vld [vmem:[%s2698_s2] ss:$8 sps:$4 sm:$0xff]   ;;  %v1819_v12 = vld [vmem:[%s2697_s1 + $0x18] sm:$0xff]  }
   0x3   :  { %v1813_v6 = vld [vmem:[%s2697_s1] sm:$0xff]   ;;  %v1834_v11 = vld [vmem:[%s2697_s1 + $0x48] sm:$0xff]   ;;  %v1836_v13 = vld [vmem:[%s2697_s1 + $0x50] sm:$0xff]  }
   0x4   :  { %1661 = vmatprep.subr.msk.bf16.mxu0 %vm235_vm0, %v1660_v2  ;;  %v237_v5 = vsel %vm235_vm0, %v1659_v3, 0  ;;  %1744 = vmatprep.subr.msk.bf16.mxu1 %vm235_vm0, %v1660_v2  ;;  %v1832_v9 = vld [vmem:[%s2697_s1 + $0x40] sm:$0xff]   ;;  %v1838_v15 = vld [vmem:[%s2697_s1 + $0x58] sm:$0xff]   ;;  %v1821_v16 = vld [vmem:[%s2697_s1 + $0x28] sm:$0xff]  }
   0x5   :  { %243 = vmatpush1.bf16.msra.mxu0 %v237_v5  ;;  %1745 = vmatpush1.bf16.msra.mxu1 %v237_v5  ;;  %v1820_v14 = vld [vmem:[%s2697_s1 + $0x20] sm:$0xff]   ;;  %v1822_v18 = vld [vmem:[%s2697_s1 + $0x30] sm:$0xff]   ;;  %v1842_v19 = vld [vmem:[%s2697_s1 + $0x68] sm:$0xff]  }
   0x6   :  { %574 = vmatprep.subr.bf16.mxu0 %v1816_v4  ;;  %v1840_v17 = vld [vmem:[%s2697_s1 + $0x60] sm:$0xff]   ;;  %v1823_v20 = vld [vmem:[%s2697_s1 + $0x38] sm:$0xff]   ;;  %v1844_v21 = vld [vmem:[%s2697_s1 + $0x70] sm:$0xff]  }
   0x7   :  { %v1848_v22 = vld [vmem:[%s2700_s5] ss:$8 sps:$4 sm:$0xff]   ;;  %v1850_v23 = vld [vmem:[%s2700_s5 + $0x4] ss:$8 sps:$4 sm:$0xff]   ;;  %v1853_v24 = vld [vmem:[%s2700_s5 + $0x14] ss:$8 sps:$4 sm:$0xff]  }
   0x8   :  { %1662 = vmatmul.mubr.msk.bf16.vlgmr.msra.gmra.mrb[0].mxu0 %vm186_vm1, %v1813_v6  ;;  %1670 = vmatmul.mubr.msk.bf16.vlgmr.msra.gmra.mrb[0].mxu1 %vm186_vm1, %v1832_v9  ;;  %v1824_v25 = vld [vmem:[%s2699_s0] sm:$0xff]   ;;  %v1851_v26 = vld [vmem:[%s2700_s5 + $0x10] ss:$8 sps:$4 sm:$0xff]   ;;  %v1859_v30 = vld [vmem:[%s2700_s5 + $0x34] ss:$8 sps:$4 sm:$0xff]  }
   0x9   :  { %575 = vmatpush1.bf16.msra.mxu0 %v1814_v7  ;;  %284 = vmatprep.mubr.bf16.mxu0 %v1896_v1  ;;  %v1856_v27 = vld [vmem:[%s2700_s5 + $0x24] ss:$8 sps:$4 sm:$0xff]   ;;  %v1846_v28 = vld [vmem:[%s2697_s1 + $0x78] sm:$0xff]   ;;  %v1854_v29 = vld [vmem:[%s2700_s5 + $0x20] ss:$8 sps:$4 sm:$0xff]  }
   0xa   :  { %364 = vmatprep.mubr.bf16.mxu1 %v1896_v1  ;;  %1143 = vmatprep.subr.bf16.mxu1 %v1850_v23  ;;  %v1825_v31 = vld [vmem:[%s2699_s0 + $0x8] sm:$0xff]   ;;  %v1857_v32 = vld [vmem:[%s2700_s5 + $0x30] ss:$8 sps:$4 sm:$0xff]   ;;  %v1865_v36 = vld [vmem:[%s2700_s5 + $0x54] ss:$8 sps:$4 sm:$0xff]  }
   0xb   :  { %1144 = vmatpush1.bf16.msra.mxu1 %v1848_v22  ;;  %v1862_v33 = vld [vmem:[%s2700_s5 + $0x44] ss:$8 sps:$4 sm:$0xff]   ;;  %v1860_v34 = vld [vmem:[%s2700_s5 + $0x40] ss:$8 sps:$4 sm:$0xff]   ;;  %v1826_v35 = vld [vmem:[%s2699_s0 + $0x10] sm:$0xff]  }
   0xc   :  { %1145 = vmatprep.subr.bf16.mxu1 %v1853_v24  ;;  %v1863_v37 = vld [vmem:[%s2700_s5 + $0x50] ss:$8 sps:$4 sm:$0xff]   ;;  %v1868_v38 = vld [vmem:[%s2700_s5 + $0x64] ss:$8 sps:$4 sm:$0xff]   ;;  %v1866_v39 = vld [vmem:[%s2700_s5 + $0x60] ss:$8 sps:$4 sm:$0xff]  }
   0xd   :  { %v1871_v40 = vld [vmem:[%s2700_s5 + $0x74] ss:$8 sps:$4 sm:$0xff]   ;;  %v1869_v42 = vld [vmem:[%s2700_s5 + $0x70] ss:$8 sps:$4 sm:$0xff]   ;;  %v1874_v43 = vld [vmem:[%s2700_s5 + $0x84] ss:$8 sps:$4 sm:$0xff]  }
   0xe   :  { %v1827_v41 = vld [vmem:[%s2699_s0 + $0x18] sm:$0xff]   ;;  %v1872_v44 = vld [vmem:[%s2700_s5 + $0x80] ss:$8 sps:$4 sm:$0xff]   ;;  %v1880_v48 = vld [vmem:[%s2700_s5 + $0xa4] ss:$8 sps:$4 sm:$0xff]  }
   0xf   :  { %1146 = vmatpush1.bf16.msra.mxu1 %v1851_v26  ;;  %v1877_v45 = vld [vmem:[%s2700_s5 + $0x94] ss:$8 sps:$4 sm:$0xff]   ;;  %v1828_v46 = vld [vmem:[%s2699_s0 + $0x20] sm:$0xff]   ;;  %v1875_v47 = vld [vmem:[%s2700_s5 + $0x90] ss:$8 sps:$4 sm:$0xff]  }
  0x10   :  { %1663 = vmatmul.mubr.msk.bf16.gmra.mrb[4].mxu0 %vm186_vm1, %v1817_v8  ;;  %1671 = vmatmul.mubr.msk.bf16.gmra.mrb[4].mxu1 %vm186_vm1, %v1834_v11  ;;  %v1878_v49 = vld [vmem:[%s2700_s5 + $0xa0] ss:$8 sps:$4 sm:$0xff]   ;;  %v1883_v50 = vld [vmem:[%s2700_s5 + $0xb4] ss:$8 sps:$4 sm:$0xff]   ;;  %v1881_v52 = vld [vmem:[%s2700_s5 + $0xb0] ss:$8 sps:$4 sm:$0xff]  }
  0x11   :  { %294 = vmatprep.mubr.bf16.mxu0 %v1896_v1  ;;  %374 = vmatprep.mubr.bf16.mxu1 %v1896_v1  ;;  %v1829_v51 = vld [vmem:[%s2699_s0 + $0x28] sm:$0xff]   ;;  %v1889_v55 = vld [vmem:[%s2700_s5 + $0xd4] ss:$8 sps:$4 sm:$0xff]   ;;  %v1887_v57 = vld [vmem:[%s2700_s5 + $0xd0] ss:$8 sps:$4 sm:$0xff]  }
  0x12   :  { %1147 = vmatprep.subr.bf16.mxu1 %v1856_v27  ;;  %v1886_v53 = vld [vmem:[%s2700_s5 + $0xc4] ss:$8 sps:$4 sm:$0xff]   ;;  %v1884_v54 = vld [vmem:[%s2700_s5 + $0xc0] ss:$8 sps:$4 sm:$0xff]   ;;  %v1830_v56 = vld [vmem:[%s2699_s0 + $0x30] sm:$0xff]   ;;  %v769_v27 = vlaneseq }
  0x13   :  { %1148 = vmatpush1.bf16.msra.mxu1 %v1854_v29  ;;  %v1831_v58 = vld [vmem:[%s2699_s0 + $0x38] sm:$0xff]   ;;  %v1833_v59 = vld [vmem:[%s2699_s0 + $0x40] sm:$0xff]   ;;  %v1835_v60 = vld [vmem:[%s2699_s0 + $0x48] sm:$0xff]  }
  0x14   :  { %1149 = vmatprep.subr.bf16.mxu1 %v1859_v30  ;;  %v1837_v61 = vld [vmem:[%s2699_s0 + $0x50] sm:$0xff]   ;;  %v1839_v62 = vld [vmem:[%s2699_s0 + $0x58] sm:$0xff]   ;;  %v1892_v63 = vld [vmem:[%s2700_s5 + $0xe4] ss:$8 sps:$4 sm:$0xff]  }
  0x15   :  { %v1890_v0 = vld [vmem:[%s2700_s5 + $0xe0] ss:$8 sps:$4 sm:$0xff]   ;;  %v1895_v2 = vld [vmem:[%s2700_s5 + $0xf4] ss:$8 sps:$4 sm:$0xff]   ;;  %v1893_v3 = vld [vmem:[%s2700_s5 + $0xf0] ss:$8 sps:$4 sm:$0xff]  }
  0x16   :  { %v1841_v4 = vld [vmem:[%s2699_s0 + $0x60] sm:$0xff]   ;;  %v1843_v5 = vld [vmem:[%s2699_s0 + $0x68] sm:$0xff]   ;;  %v1845_v6 = vld [vmem:[%s2699_s0 + $0x70] sm:$0xff]  }
  0x17   :  { %1150 = vmatpush1.bf16.msra.mxu1 %v1857_v32  ;;  %v1847_v7 = vld [vmem:[%s2699_s0 + $0x78] sm:$0xff]  }
  0x18   :  { %1664 = vmatmul.mubr.msk.bf16.gmra.mrb[8].mxu0 %vm186_vm1, %v1818_v10  ;;  %1672 = vmatmul.mubr.msk.bf16.gmra.mrb[8].mxu1 %vm186_vm1, %v1836_v13 }
  0x19   :  { %304 = vmatprep.mubr.bf16.mxu0 %v1896_v1  ;;  %384 = vmatprep.mubr.bf16.mxu1 %v1896_v1 }
  0x1a   :  { %1151 = vmatprep.subr.bf16.mxu1 %v1862_v33 }
  0x1b   :  { %1152 = vmatpush1.bf16.msra.mxu1 %v1860_v34  ;;  %v767_v34 = vld [vmem:[%s2701_s4] sm:$0x3] }
  0x1c   :  { %1153 = vmatprep.subr.bf16.mxu1 %v1865_v36 }
  0x1f   :  { %1154 = vmatpush1.bf16.msra.mxu1 %v1863_v37 }
  0x20   :  { %1665 = vmatmul.mubr.msk.bf16.gmra.mrb[12].mxu0 %vm186_vm1, %v1819_v12  ;;  %1673 = vmatmul.mubr.msk.bf16.gmra.mrb[12].mxu1 %vm186_vm1, %v1838_v15 }
  0x21   :  { %314 = vmatprep.mubr.bf16.mxu0 %v1896_v1  ;;  %394 = vmatprep.mubr.bf16.mxu1 %v1896_v1 }
  0x22   :  { %1155 = vmatprep.subr.bf16.mxu1 %v1868_v38 }
  0x23   :  { %1156 = vmatpush1.bf16.msra.mxu1 %v1866_v39 }
  0x24   :  { %1157 = vmatprep.subr.bf16.mxu1 %v1871_v40 }
  0x27   :  { %1158 = vmatpush1.bf16.msra.mxu1 %v1869_v42 }
  0x28   :  { %1666 = vmatmul.mubr.msk.bf16.gmra.mrb[16].mxu0 %vm186_vm1, %v1820_v14  ;;  %1674 = vmatmul.mubr.msk.bf16.gmra.mrb[16].mxu1 %vm186_vm1, %v1840_v17 }
  0x29   :  { %324 = vmatprep.mubr.bf16.mxu0 %v1896_v1  ;;  %404 = vmatprep.mubr.bf16.mxu1 %v1896_v1 }
  0x2a   :  { %1159 = vmatprep.subr.bf16.mxu1 %v1874_v43 }
  0x2b   :  { %1160 = vmatpush1.bf16.msra.mxu1 %v1872_v44 }
  0x2c   :  { %1161 = vmatprep.subr.bf16.mxu1 %v1877_v45 }
  0x2f   :  { %1162 = vmatpush1.bf16.msra.mxu1 %v1875_v47 }
  0x30   :  { %1667 = vmatmul.mubr.msk.bf16.gmra.mrb[20].mxu0 %vm186_vm1, %v1821_v16  ;;  %1675 = vmatmul.mubr.msk.bf16.gmra.mrb[20].mxu1 %vm186_vm1, %v1842_v19 }
  0x31   :  { %334 = vmatprep.mubr.bf16.mxu0 %v1896_v1  ;;  %414 = vmatprep.mubr.bf16.mxu1 %v1896_v1 }
  0x32   :  { %1163 = vmatprep.subr.bf16.mxu1 %v1880_v48 }
  0x33   :  { %1164 = vmatpush1.bf16.msra.mxu1 %v1878_v49 }
  0x34   :  { %1165 = vmatprep.subr.bf16.mxu1 %v1883_v50 }
  0x37   :  { %1166 = vmatpush1.bf16.msra.mxu1 %v1881_v52 }
  0x38   :  { %1668 = vmatmul.mubr.msk.bf16.gmra.mrb[24].mxu0 %vm186_vm1, %v1822_v18  ;;  %1676 = vmatmul.mubr.msk.bf16.gmra.mrb[24].mxu1 %vm186_vm1, %v1844_v21 }
  0x39   :  { %344 = vmatprep.mubr.bf16.mxu0 %v1896_v1  ;;  %424 = vmatprep.mubr.bf16.mxu1 %v1896_v1 }
  0x3a   :  { %1167 = vmatprep.subr.bf16.mxu1 %v1886_v53 }
  0x3b   :  { %1168 = vmatpush1.bf16.msra.mxu1 %v1884_v54 }
  0x3c   :  { %1169 = vmatprep.subr.bf16.mxu1 %v1889_v55 }
  0x3f   :  { %1170 = vmatpush1.bf16.msra.mxu1 %v1887_v57 }
  0x40   :  { %1669 = vmatmul.mubr.msk.bf16.gmra.mrb[28].mxu0 %vm186_vm1, %v1823_v20  ;;  %1677 = vmatmul.mubr.msk.bf16.gmra.mrb[28].mxu1 %vm186_vm1, %v1846_v28  ;;  %v770_v28 = vshrl.u32 %v769_v27, 7 }
  0x41   :  { %606 = vmatprep.mubr.bf16.mxu0 %v1896_v1  ;;  %1171 = vmatprep.subr.bf16.mxu1 %v1892_v63 }
  0x42   :  { %v2260_v33 = vsub.s32 0, %v770_v28 }
  0x43   :  { %1172 = vmatpush1.bf16.msra.mxu1 %v1890_v0 }
  0x44   :  { %1173 = vmatprep.subr.bf16.mxu1 %v1895_v2  ;;  %v2268_v36 = vrot.slane %v767_v34, %v2260_v33 }
  0x47   :  { %1174 = vmatpush1.bf16.msra.mxu1 %v1893_v3 }
  0x48   :  { %1696 = vmatmul.mubr.msk.bf16.vlgmr.msra.gmra.mrb[0].mxu0 %vm525_vm2, %v1824_v25 }
  0x49   :  { %616 = vmatprep.mubr.bf16.mxu0 %v1896_v1 }
  0x50   :  { %1697 = vmatmul.mubr.msk.bf16.gmra.mrb[4].mxu0 %vm525_vm2, %v1825_v31 }
  0x51   :  { %626 = vmatprep.mubr.bf16.mxu0 %v1896_v1 }
  0x58   :  { %1698 = vmatmul.mubr.msk.bf16.gmra.mrb[8].mxu0 %vm525_vm2, %v1826_v35  ;;  %v2265_v35 = vsub.s32 1, %v770_v28 }
  0x59   :  { %636 = vmatprep.mubr.bf16.mxu0 %v1896_v1 }
  0x5a   :  { %v2273_v38 = vrot.slane %v767_v34, %v2265_v35 }
  0x60   :  { %1699 = vmatmul.mubr.msk.bf16.gmra.mrb[12].mxu0 %vm525_vm2, %v1827_v41 }
  0x61   :  { %646 = vmatprep.mubr.bf16.mxu0 %v1896_v1 }
  0x68   :  { %1700 = vmatmul.mubr.msk.bf16.gmra.mrb[16].mxu0 %vm525_vm2, %v1828_v46 }
  0x69   :  { %656 = vmatprep.mubr.bf16.mxu0 %v1896_v1 }
  0x70   :  { %1701 = vmatmul.mubr.msk.bf16.gmra.mrb[20].mxu0 %vm525_vm2, %v1829_v51 }
  0x71   :  { %666 = vmatprep.mubr.bf16.mxu0 %v1896_v1 }
  0x78   :  { %1702 = vmatmul.mubr.msk.bf16.gmra.mrb[24].mxu0 %vm525_vm2, %v1830_v56 }
  0x79   :  { %676 = vmatprep.mubr.bf16.mxu0 %v1896_v1 }
  0x80   :  { %1703 = vmatmul.mubr.msk.bf16.gmra.mrb[28].mxu0 %vm525_vm2, %v1831_v58 }
  0x81   :  { %686 = vmatprep.mubr.bf16.mxu0 %v1896_v1 }
  0x88   :  { %1704 = vmatmul.mubr.msk.bf16.gmra.mrb[32].mxu0 %vm525_vm2, %v1833_v59 }
  0x89   :  { %696 = vmatprep.mubr.bf16.mxu0 %v1896_v1 }
  0x90   :  { %1705 = vmatmul.mubr.msk.bf16.gmra.mrb[36].mxu0 %vm525_vm2, %v1835_v60 }
  0x91   :  { %706 = vmatprep.mubr.bf16.mxu0 %v1896_v1 }
  0x98   :  { %1706 = vmatmul.mubr.msk.bf16.gmra.mrb[40].mxu0 %vm525_vm2, %v1837_v61 }
  0x99   :  { %716 = vmatprep.mubr.bf16.mxu0 %v1896_v1 }
  0xa0   :  { %1707 = vmatmul.mubr.msk.bf16.gmra.mrb[44].mxu0 %vm525_vm2, %v1839_v62 }
  0xa1   :  { %726 = vmatprep.mubr.bf16.mxu0 %v1896_v1 }
  0xa8   :  { %1708 = vmatmul.mubr.msk.bf16.gmra.mrb[48].mxu0 %vm525_vm2, %v1841_v4 }
  0xa9   :  { %736 = vmatprep.mubr.bf16.mxu0 %v1896_v1 }
  0xb0   :  { %1709 = vmatmul.mubr.msk.bf16.gmra.mrb[52].mxu0 %vm525_vm2, %v1843_v5 }
  0xb1   :  { %746 = vmatprep.mubr.bf16.mxu0 %v1896_v1 }
  0xb8   :  { %1710 = vmatmul.mubr.msk.bf16.gmra.mrb[56].mxu0 %vm525_vm2, %v1845_v6 }
  0xb9   :  { %756 = vmatprep.mubr.bf16.mxu0 %v1896_v1 }
  0xc0   :  { %1711 = vmatmul.mubr.msk.bf16.gmra.mrb[60].mxu0 %vm525_vm2, %v1847_v7 }
  0xdb   :  { %v2212_v8 = vpop.f32.mrb[0].mxu1 }
  0xdc   :  { %v2214_v9 = vpop.f32.mrb[1].mxu1 }
  0xdd   :  { %v2216_v10 = vpop.f32.mrb[2].mxu1 }
  0xde   :  { %v2218_v11 = vpop.f32.mrb[3].mxu1 }
  0xe3   :  { %v2220_v12 = vpop.f32.mrb[4].mxu1 }
  0xe4   :  { %v2222_v13 = vpop.f32.mrb[5].mxu1 }
  0xe5   :  { %v2224_v14 = vpop.f32.mrb[6].mxu1 }
  0xe6   :  { %v2226_v1 = vpop.f32.mrb[7].mxu1 }
  0xeb   :  { %v2228_v15 = vpop.f32.mrb[8].mxu1 }
  0xec   :  { %v2230_v16 = vpop.f32.mrb[9].mxu1 }
  0xed   :  { %v2232_v17 = vpop.f32.mrb[10].mxu1 }
  0xee   :  { %v2234_v18 = vpop.f32.mrb[11].mxu1 }
  0xf3   :  { %v2236_v19 = vpop.f32.mrb[12].mxu1 }
  0xf4   :  { %v2238_v20 = vpop.f32.mrb[13].mxu1 }
  0xf5   :  { %v2240_v21 = vpop.f32.mrb[14].mxu1 }
  0xf6   :  { %v2242_v22 = vpop.f32.mrb[15].mxu1 }
  0xfb   :  { %v2244_v23 = vpop.f32.mrb[16].mxu1 }
  0xfc   :  { %v2246_v24 = vpop.f32.mrb[17].mxu1 }
  0xfd   :  { %v2248_v25 = vpop.f32.mrb[18].mxu1 }
  0xfe   :  { %v2250_v26 = vpop.f32.mrb[19].mxu1 }
 0x103   :  { %v2252_v29 = vpop.f32.mrb[20].mxu1 }
 0x104   :  { %v2254_v30 = vpop.f32.mrb[21].mxu1 }
 0x105   :  { %v2256_v31 = vpop.f32.mrb[22].mxu1 }
 0x106   :  { %v2258_v32 = vpop.f32.mrb[23].mxu1 }
 0x10b   :  { %v2270_v37 = vpop.f32.mrb[24].mxu1 }
 0x10c   :  { %v2275_v39 = vpop.f32.mrb[25].mxu1 }
 0x10d   :  { %v2277_v40 = vpop.f32.mrb[26].mxu1 }
 0x10e   :  { %v2279_v42 = vpop.f32.mrb[27].mxu1 }
 0x113   :  { %v2285_v52 = vpop.f32.mrb[28].mxu1 }
 0x114   :  { %v2287_v55 = vpop.f32.mrb[29].mxu1 }
 0x115   :  { %v2289_v57 = vpop.f32.mrb[30].mxu1 }
 0x116   :  { %v2291_v60 = vpop.f32.mrb[31].mxu1 }
 0x11b   :  { %v608_v41 = vpop.f32.mrb[0].mxu0 }
 0x11c   :  { %v779_v43 = vadd.f32 %v2268_v36, %v608_v41  ;;  %v610_v44 = vpop.f32.mrb[1].mxu0 }
 0x11d   :  { %v780_v45 = vadd.f32 %v2273_v38, %v610_v44  ;;  %v612_v46 = vpop.f32.mrb[2].mxu0 }
 0x11e   :  { %v781_v47 = vadd.f32 %v2268_v36, %v612_v46  ;;  %v614_v48 = vpop.f32.mrb[3].mxu0  ;;  %v843_v50 = vmax.f32 %v779_v43, 0.0 }
 0x11f   :  { %v782_v49 = vadd.f32 %v2273_v38, %v614_v48  ;;  %v844_v53 = vmax.f32 %v780_v45, 0.0 }
 0x120   :  { %v845_v51 = vmax.f32 %v781_v47, 0.0 }
 0x121   :  { %v846_v54 = vmax.f32 %v782_v49, 0.0 }
 0x122   :  { %v907_v56 = vpack.c.bf16 %v845_v51, %v843_v50 }
 0x123   :  { %v908_v58 = vpack.c.bf16 %v846_v54, %v844_v53  ;;  %v618_v59 = vpop.f32.mrb[4].mxu0 }
 0x124   :  { %v783_v61 = vadd.f32 %v2268_v36, %v618_v59  ;;  %v620_v62 = vpop.f32.mrb[5].mxu0 }
 0x125   :  { %v784_v63 = vadd.f32 %v2273_v38, %v620_v62  ;;  %v622_v0 = vpop.f32.mrb[6].mxu0  ;;  %1175 = vmatprep.mubr.bf16.mxu1 %v908_v58 }
 0x126   :  { %v785_v2 = vadd.f32 %v2268_v36, %v622_v0  ;;  %v624_v3 = vpop.f32.mrb[7].mxu0  ;;  %1176 = vmatmul.mubr.bf16.vlgmr.msra.gmra.mrb[32].mxu1 %v907_v56  ;;  %v847_v5 = vmax.f32 %v783_v61, 0.0 }
 0x127   :  { %v786_v4 = vadd.f32 %v2273_v38, %v624_v3  ;;  %v848_v7 = vmax.f32 %v784_v63, 0.0 }
 0x128   :  { %v849_v6 = vmax.f32 %v785_v2, 0.0 }
 0x129   :  { %v850_v27 = vmax.f32 %v786_v4, 0.0 }
 0x12a   :  { %v909_v28 = vpack.c.bf16 %v849_v6, %v847_v5 }
 0x12b   :  { %v910_v34 = vpack.c.bf16 %v850_v27, %v848_v7  ;;  %v628_v41 = vpop.f32.mrb[8].mxu0 }
 0x12c   :  { %v787_v43 = vadd.f32 %v2268_v36, %v628_v41  ;;  %v630_v44 = vpop.f32.mrb[9].mxu0 }
 0x12d   :  { %v788_v45 = vadd.f32 %v2273_v38, %v630_v44  ;;  %v632_v46 = vpop.f32.mrb[10].mxu0  ;;  %1185 = vmatprep.mubr.bf16.mxu1 %v910_v34 }
 0x12e   :  { %v789_v47 = vadd.f32 %v2268_v36, %v632_v46  ;;  %v634_v48 = vpop.f32.mrb[11].mxu0  ;;  %1186 = vmatmul.mubr.bf16.gmra.mrb[36].mxu1 %v909_v28  ;;  %v851_v50 = vmax.f32 %v787_v43, 0.0 }
 0x12f   :  { %v790_v49 = vadd.f32 %v2273_v38, %v634_v48  ;;  %v852_v53 = vmax.f32 %v788_v45, 0.0 }
 0x130   :  { %v853_v51 = vmax.f32 %v789_v47, 0.0 }
 0x131   :  { %v854_v54 = vmax.f32 %v790_v49, 0.0 }
 0x132   :  { %v911_v56 = vpack.c.bf16 %v853_v51, %v851_v50 }
 0x133   :  { %v912_v58 = vpack.c.bf16 %v854_v54, %v852_v53  ;;  %v638_v59 = vpop.f32.mrb[12].mxu0 }
 0x134   :  { %v791_v61 = vadd.f32 %v2268_v36, %v638_v59  ;;  %v640_v62 = vpop.f32.mrb[13].mxu0 }
 0x135   :  { %v792_v63 = vadd.f32 %v2273_v38, %v640_v62  ;;  %v642_v0 = vpop.f32.mrb[14].mxu0  ;;  %1195 = vmatprep.mubr.bf16.mxu1 %v912_v58 }
 0x136   :  { %v793_v2 = vadd.f32 %v2268_v36, %v642_v0  ;;  %v644_v3 = vpop.f32.mrb[15].mxu0  ;;  %1196 = vmatmul.mubr.bf16.gmra.mrb[40].mxu1 %v911_v56  ;;  %v855_v5 = vmax.f32 %v791_v61, 0.0 }
 0x137   :  { %v794_v4 = vadd.f32 %v2273_v38, %v644_v3  ;;  %v856_v7 = vmax.f32 %v792_v63, 0.0 }
 0x138   :  { %v857_v6 = vmax.f32 %v793_v2, 0.0 }
 0x139   :  { %v858_v27 = vmax.f32 %v794_v4, 0.0 }
 0x13a   :  { %v913_v28 = vpack.c.bf16 %v857_v6, %v855_v5 }
 0x13b   :  { %v914_v34 = vpack.c.bf16 %v858_v27, %v856_v7  ;;  %v648_v41 = vpop.f32.mrb[16].mxu0 }
 0x13c   :  { %v795_v43 = vadd.f32 %v2268_v36, %v648_v41  ;;  %v650_v44 = vpop.f32.mrb[17].mxu0 }
 0x13d   :  { %v796_v45 = vadd.f32 %v2273_v38, %v650_v44  ;;  %v652_v46 = vpop.f32.mrb[18].mxu0  ;;  %1205 = vmatprep.mubr.bf16.mxu1 %v914_v34 }
 0x13e   :  { %v797_v47 = vadd.f32 %v2268_v36, %v652_v46  ;;  %v654_v48 = vpop.f32.mrb[19].mxu0  ;;  %1206 = vmatmul.mubr.bf16.gmra.mrb[44].mxu1 %v913_v28  ;;  %v859_v50 = vmax.f32 %v795_v43, 0.0 }
 0x13f   :  { %v798_v49 = vadd.f32 %v2273_v38, %v654_v48  ;;  %v860_v53 = vmax.f32 %v796_v45, 0.0 }
 0x140   :  { %v861_v51 = vmax.f32 %v797_v47, 0.0 }
 0x141   :  { %v862_v54 = vmax.f32 %v798_v49, 0.0 }
 0x142   :  { %v915_v56 = vpack.c.bf16 %v861_v51, %v859_v50 }
 0x143   :  { %v916_v58 = vpack.c.bf16 %v862_v54, %v860_v53  ;;  %v658_v59 = vpop.f32.mrb[20].mxu0 }
 0x144   :  { %v799_v61 = vadd.f32 %v2268_v36, %v658_v59  ;;  %v660_v62 = vpop.f32.mrb[21].mxu0 }
 0x145   :  { %v800_v63 = vadd.f32 %v2273_v38, %v660_v62  ;;  %v662_v0 = vpop.f32.mrb[22].mxu0  ;;  %1215 = vmatprep.mubr.bf16.mxu1 %v916_v58 }
 0x146   :  { %v801_v2 = vadd.f32 %v2268_v36, %v662_v0  ;;  %v664_v3 = vpop.f32.mrb[23].mxu0  ;;  %1216 = vmatmul.mubr.bf16.gmra.mrb[48].mxu1 %v915_v56  ;;  %v863_v5 = vmax.f32 %v799_v61, 0.0 }
 0x147   :  { %v802_v4 = vadd.f32 %v2273_v38, %v664_v3  ;;  %v864_v7 = vmax.f32 %v800_v63, 0.0 }
 0x148   :  { %v865_v6 = vmax.f32 %v801_v2, 0.0 }
 0x149   :  { %v866_v27 = vmax.f32 %v802_v4, 0.0 }
 0x14a   :  { %v917_v28 = vpack.c.bf16 %v865_v6, %v863_v5 }
 0x14b   :  { %v918_v34 = vpack.c.bf16 %v866_v27, %v864_v7  ;;  %v668_v41 = vpop.f32.mrb[24].mxu0 }
 0x14c   :  { %v803_v43 = vadd.f32 %v2268_v36, %v668_v41  ;;  %v670_v44 = vpop.f32.mrb[25].mxu0 }
 0x14d   :  { %v804_v45 = vadd.f32 %v2273_v38, %v670_v44  ;;  %v672_v46 = vpop.f32.mrb[26].mxu0  ;;  %1225 = vmatprep.mubr.bf16.mxu1 %v918_v34 }
 0x14e   :  { %v805_v47 = vadd.f32 %v2268_v36, %v672_v46  ;;  %v674_v48 = vpop.f32.mrb[27].mxu0  ;;  %1226 = vmatmul.mubr.bf16.gmra.mrb[52].mxu1 %v917_v28  ;;  %v867_v50 = vmax.f32 %v803_v43, 0.0 }
 0x14f   :  { %v806_v49 = vadd.f32 %v2273_v38, %v674_v48  ;;  %v868_v53 = vmax.f32 %v804_v45, 0.0 }
 0x150   :  { %v869_v51 = vmax.f32 %v805_v47, 0.0 }
 0x151   :  { %v870_v54 = vmax.f32 %v806_v49, 0.0 }
 0x152   :  { %v919_v56 = vpack.c.bf16 %v869_v51, %v867_v50 }
 0x153   :  { %v920_v58 = vpack.c.bf16 %v870_v54, %v868_v53  ;;  %v678_v59 = vpop.f32.mrb[28].mxu0 }
 0x154   :  { %v807_v61 = vadd.f32 %v2268_v36, %v678_v59  ;;  %v680_v62 = vpop.f32.mrb[29].mxu0 }
 0x155   :  { %v808_v63 = vadd.f32 %v2273_v38, %v680_v62  ;;  %v682_v0 = vpop.f32.mrb[30].mxu0  ;;  %1235 = vmatprep.mubr.bf16.mxu1 %v920_v58 }
 0x156   :  { %v809_v2 = vadd.f32 %v2268_v36, %v682_v0  ;;  %v684_v3 = vpop.f32.mrb[31].mxu0  ;;  %1236 = vmatmul.mubr.bf16.gmra.mrb[56].mxu1 %v919_v56  ;;  %v871_v5 = vmax.f32 %v807_v61, 0.0 }
 0x157   :  { %v810_v4 = vadd.f32 %v2273_v38, %v684_v3  ;;  %v872_v7 = vmax.f32 %v808_v63, 0.0 }
 0x158   :  { %v873_v6 = vmax.f32 %v809_v2, 0.0 }
 0x159   :  { %v874_v27 = vmax.f32 %v810_v4, 0.0 }
 0x15a   :  { %v921_v28 = vpack.c.bf16 %v873_v6, %v871_v5 }
 0x15b   :  { %v922_v34 = vpack.c.bf16 %v874_v27, %v872_v7  ;;  %v688_v41 = vpop.f32.mrb[32].mxu0 }
 0x15c   :  { %v689_v43 = vadd.f32 %v688_v41, %v2212_v8  ;;  %v690_v44 = vpop.f32.mrb[33].mxu0 }
 0x15d   :  { %v691_v45 = vadd.f32 %v690_v44, %v2214_v9  ;;  %v692_v46 = vpop.f32.mrb[34].mxu0  ;;  %1245 = vmatprep.mubr.bf16.mxu1 %v922_v34 }
 0x15e   :  { %v811_v47 = vadd.f32 %v2268_v36, %v689_v43  ;;  %v693_v48 = vadd.f32 %v692_v46, %v2216_v10  ;;  %v694_v49 = vpop.f32.mrb[35].mxu0  ;;  %1246 = vmatmul.mubr.bf16.gmra.mrb[60].mxu1 %v921_v28 }
 0x15f   :  { %v812_v50 = vadd.f32 %v2273_v38, %v691_v45  ;;  %v695_v51 = vadd.f32 %v694_v49, %v2218_v11 }
 0x160   :  { %v813_v53 = vadd.f32 %v2268_v36, %v693_v48  ;;  %v875_v8 = vmax.f32 %v811_v47, 0.0 }
 0x161   :  { %v814_v54 = vadd.f32 %v2273_v38, %v695_v51  ;;  %v876_v58 = vmax.f32 %v812_v50, 0.0 }
 0x162   :  { %v877_v56 = vmax.f32 %v813_v53, 0.0 }
 0x163   :  { %v878_v9 = vmax.f32 %v814_v54, 0.0  ;;  %v698_v59 = vpop.f32.mrb[36].mxu0 }
 0x164   :  { %v699_v61 = vadd.f32 %v698_v59, %v2220_v12  ;;  %v700_v62 = vpop.f32.mrb[37].mxu0  ;;  %v923_v63 = vpack.c.bf16 %v877_v56, %v875_v8 }
 0x165   :  { %v701_v10 = vadd.f32 %v700_v62, %v2222_v13  ;;  %v702_v0 = vpop.f32.mrb[38].mxu0  ;;  %v924_v2 = vpack.c.bf16 %v878_v9, %v876_v58 }
 0x166   :  { %v815_v3 = vadd.f32 %v2268_v36, %v699_v61  ;;  %v703_v11 = vadd.f32 %v702_v0, %v2224_v14  ;;  %v704_v4 = vpop.f32.mrb[39].mxu0 }
 0x167   :  { %v816_v5 = vadd.f32 %v2273_v38, %v701_v10  ;;  %v705_v6 = vadd.f32 %v704_v4, %v2226_v1  ;;  %1255 = vmatprep.mubr.bf16.mxu1 %v924_v2 }
 0x168   :  { %v817_v7 = vadd.f32 %v2268_v36, %v703_v11  ;;  %1256 = vmatmul.mubr.bf16.gmra.mrb[64].mxu1 %v923_v63  ;;  %v879_v27 = vmax.f32 %v815_v3, 0.0 }
 0x169   :  { %v818_v12 = vadd.f32 %v2273_v38, %v705_v6  ;;  %v880_v13 = vmax.f32 %v816_v5, 0.0 }
 0x16a   :  { %v881_v28 = vmax.f32 %v817_v7, 0.0 }
 0x16b   :  { %v882_v34 = vmax.f32 %v818_v12, 0.0  ;;  %v708_v41 = vpop.f32.mrb[40].mxu0 }
 0x16c   :  { %v709_v43 = vadd.f32 %v708_v41, %v2228_v15  ;;  %v710_v44 = vpop.f32.mrb[41].mxu0  ;;  %v925_v14 = vpack.c.bf16 %v881_v28, %v879_v27 }
 0x16d   :  { %v711_v45 = vadd.f32 %v710_v44, %v2230_v16  ;;  %v712_v46 = vpop.f32.mrb[42].mxu0  ;;  %v926_v47 = vpack.c.bf16 %v882_v34, %v880_v13 }
 0x16e   :  { %v819_v1 = vadd.f32 %v2268_v36, %v709_v43  ;;  %v713_v48 = vadd.f32 %v712_v46, %v2232_v17  ;;  %v714_v49 = vpop.f32.mrb[43].mxu0 }
 0x16f   :  { %v820_v50 = vadd.f32 %v2273_v38, %v711_v45  ;;  %v715_v51 = vadd.f32 %v714_v49, %v2234_v18  ;;  %1265 = vmatprep.mubr.bf16.mxu1 %v926_v47 }
 0x170   :  { %v821_v53 = vadd.f32 %v2268_v36, %v713_v48  ;;  %1266 = vmatmul.mubr.bf16.gmra.mrb[68].mxu1 %v925_v14  ;;  %v883_v54 = vmax.f32 %v819_v1, 0.0 }
 0x171   :  { %v822_v15 = vadd.f32 %v2273_v38, %v715_v51  ;;  %v884_v16 = vmax.f32 %v820_v50, 0.0 }
 0x172   :  { %v885_v8 = vmax.f32 %v821_v53, 0.0 }
 0x173   :  { %v886_v56 = vmax.f32 %v822_v15, 0.0  ;;  %v718_v58 = vpop.f32.mrb[44].mxu0 }
 0x174   :  { %v719_v9 = vadd.f32 %v718_v58, %v2236_v19  ;;  %v720_v59 = vpop.f32.mrb[45].mxu0  ;;  %v927_v17 = vpack.c.bf16 %v885_v8, %v883_v54 }
 0x175   :  { %v721_v61 = vadd.f32 %v720_v59, %v2238_v20  ;;  %v722_v62 = vpop.f32.mrb[46].mxu0  ;;  %v928_v63 = vpack.c.bf16 %v886_v56, %v884_v16 }
 0x176   :  { %v823_v18 = vadd.f32 %v2268_v36, %v719_v9  ;;  %v723_v10 = vadd.f32 %v722_v62, %v2240_v21  ;;  %v724_v0 = vpop.f32.mrb[47].mxu0 }
 0x177   :  { %v824_v2 = vadd.f32 %v2273_v38, %v721_v61  ;;  %v725_v3 = vadd.f32 %v724_v0, %v2242_v22  ;;  %1275 = vmatprep.mubr.bf16.mxu1 %v928_v63 }
 0x178   :  { %v825_v11 = vadd.f32 %v2268_v36, %v723_v10  ;;  %1276 = vmatmul.mubr.bf16.gmra.mrb[72].mxu1 %v927_v17  ;;  %v887_v4 = vmax.f32 %v823_v18, 0.0 }
 0x179   :  { %v826_v19 = vadd.f32 %v2273_v38, %v725_v3  ;;  %v888_v20 = vmax.f32 %v824_v2, 0.0 }
 0x17a   :  { %v889_v5 = vmax.f32 %v825_v11, 0.0 }
 0x17b   :  { %v890_v6 = vmax.f32 %v826_v19, 0.0  ;;  %v728_v7 = vpop.f32.mrb[48].mxu0 }
 0x17c   :  { %v729_v12 = vadd.f32 %v728_v7, %v2244_v23  ;;  %v730_v27 = vpop.f32.mrb[49].mxu0  ;;  %v929_v21 = vpack.c.bf16 %v889_v5, %v887_v4 }
 0x17d   :  { %v731_v28 = vadd.f32 %v730_v27, %v2246_v24  ;;  %v732_v13 = vpop.f32.mrb[50].mxu0  ;;  %v930_v34 = vpack.c.bf16 %v890_v6, %v888_v20 }
 0x17e   :  { %v827_v22 = vadd.f32 %v2268_v36, %v729_v12  ;;  %v733_v41 = vadd.f32 %v732_v13, %v2248_v25  ;;  %v734_v43 = vpop.f32.mrb[51].mxu0 }
 0x17f   :  { %v828_v44 = vadd.f32 %v2273_v38, %v731_v28  ;;  %v735_v14 = vadd.f32 %v734_v43, %v2250_v26  ;;  %1285 = vmatprep.mubr.bf16.mxu1 %v930_v34 }
 0x180   :  { %v829_v45 = vadd.f32 %v2268_v36, %v733_v41  ;;  %1286 = vmatmul.mubr.bf16.gmra.mrb[76].mxu1 %v929_v21  ;;  %v891_v46 = vmax.f32 %v827_v22, 0.0 }
 0x181   :  { %v830_v23 = vadd.f32 %v2273_v38, %v735_v14  ;;  %v892_v24 = vmax.f32 %v828_v44, 0.0 }
 0x182   :  { %v893_v47 = vmax.f32 %v829_v45, 0.0 }
 0x183   :  { %v894_v1 = vmax.f32 %v830_v23, 0.0  ;;  %v738_v48 = vpop.f32.mrb[52].mxu0 }
 0x184   :  { %v739_v49 = vadd.f32 %v738_v48, %v2252_v29  ;;  %v740_v50 = vpop.f32.mrb[53].mxu0  ;;  %v931_v25 = vpack.c.bf16 %v893_v47, %v891_v46 }
 0x185   :  { %v741_v51 = vadd.f32 %v740_v50, %v2254_v30  ;;  %v742_v53 = vpop.f32.mrb[54].mxu0  ;;  %v932_v15 = vpack.c.bf16 %v894_v1, %v892_v24 }
 0x186   :  { %v831_v26 = vadd.f32 %v2268_v36, %v739_v49  ;;  %v743_v54 = vadd.f32 %v742_v53, %v2256_v31  ;;  %v744_v8 = vpop.f32.mrb[55].mxu0 }
 0x187   :  { %v832_v16 = vadd.f32 %v2273_v38, %v741_v51  ;;  %v745_v56 = vadd.f32 %v744_v8, %v2258_v32  ;;  %1295 = vmatprep.mubr.bf16.mxu1 %v932_v15 }
 0x188   :  { %v833_v58 = vadd.f32 %v2268_v36, %v743_v54  ;;  %1296 = vmatmul.mubr.bf16.gmra.mrb[80].mxu1 %v931_v25  ;;  %v895_v9 = vmax.f32 %v831_v26, 0.0 }
 0x189   :  { %v834_v29 = vadd.f32 %v2273_v38, %v745_v56  ;;  %v896_v30 = vmax.f32 %v832_v16, 0.0 }
 0x18a   :  { %v897_v59 = vmax.f32 %v833_v58, 0.0 }
 0x18b   :  { %v898_v17 = vmax.f32 %v834_v29, 0.0  ;;  %v748_v61 = vpop.f32.mrb[56].mxu0 }
 0x18c   :  { %v749_v62 = vadd.f32 %v748_v61, %v2270_v37  ;;  %v750_v63 = vpop.f32.mrb[57].mxu0  ;;  %v933_v31 = vpack.c.bf16 %v897_v59, %v895_v9 }
 0x18d   :  { %v751_v18 = vadd.f32 %v750_v63, %v2275_v39  ;;  %v752_v10 = vpop.f32.mrb[58].mxu0  ;;  %v934_v0 = vpack.c.bf16 %v898_v17, %v896_v30 }
 0x18e   :  { %v835_v32 = vadd.f32 %v2268_v36, %v749_v62  ;;  %v753_v2 = vadd.f32 %v752_v10, %v2277_v40  ;;  %v754_v3 = vpop.f32.mrb[59].mxu0 }
 0x18f   :  { %v836_v11 = vadd.f32 %v2273_v38, %v751_v18  ;;  %v755_v19 = vadd.f32 %v754_v3, %v2279_v42  ;;  %1305 = vmatprep.mubr.bf16.mxu1 %v934_v0 }
 0x190   :  { %v837_v4 = vadd.f32 %v2268_v36, %v753_v2  ;;  %1306 = vmatmul.mubr.bf16.gmra.mrb[84].mxu1 %v933_v31  ;;  %v899_v5 = vmax.f32 %v835_v32, 0.0 }
 0x191   :  { %v838_v37 = vadd.f32 %v2273_v38, %v755_v19  ;;  %v900_v39 = vmax.f32 %v836_v11, 0.0 }
 0x192   :  { %v901_v20 = vmax.f32 %v837_v4, 0.0 }
 0x193   :  { %v902_v6 = vmax.f32 %v838_v37, 0.0  ;;  %v758_v7 = vpop.f32.mrb[60].mxu0 }
 0x194   :  { %v759_v12 = vadd.f32 %v758_v7, %v2285_v52  ;;  %v760_v27 = vpop.f32.mrb[61].mxu0  ;;  %v935_v40 = vpack.c.bf16 %v901_v20, %v899_v5 }
 0x195   :  { %v761_v21 = vadd.f32 %v760_v27, %v2287_v55  ;;  %v762_v28 = vpop.f32.mrb[62].mxu0  ;;  %v936_v13 = vpack.c.bf16 %v902_v6, %v900_v39 }
 0x196   :  { %v839_v42 = vadd.f32 %v2268_v36, %v759_v12  ;;  %v763_v34 = vadd.f32 %v762_v28, %v2289_v57  ;;  %v764_v22 = vpop.f32.mrb[63].mxu0  ;;  %v971_v57 = vld [vmem:[%s2702_s6] sm:$0x3] }
 0x197   :  { %v840_v41 = vadd.f32 %v2273_v38, %v761_v21  ;;  %v765_v43 = vadd.f32 %v764_v22, %v2291_v60  ;;  %1315 = vmatprep.mubr.bf16.mxu1 %v936_v13  ;;  %v2389_v60 = vrot.slane %v971_v57, %v2260_v33 }
 0x198   :  { %v841_v44 = vadd.f32 %v2268_v36, %v763_v34  ;;  %1316 = vmatmul.mubr.bf16.gmra.mrb[88].mxu1 %v935_v40  ;;  %v903_v14 = vmax.f32 %v839_v42, 0.0  ;;  %v2392_v36 = vrot.slane %v971_v57, %v2265_v35 }
 0x199   :  { %v842_v52 = vadd.f32 %v2273_v38, %v765_v43  ;;  %v904_v55 = vmax.f32 %v840_v41, 0.0  ;;  %v1400_v38 = vld [vmem:[%s2703_s7] sm:$0x3] }
 0x19a   :  { %v905_v45 = vmax.f32 %v841_v44, 0.0  ;;  %v2399_v49 = vrot.slane %v1400_v38, %v2260_v33  ;;  %v2403_v51 = vrot.slane %v1400_v38, %v2265_v35 }
 0x19b   :  { %v906_v23 = vmax.f32 %v842_v52, 0.0 }
 0x19c   :  { %v937_v46 = vpack.c.bf16 %v905_v45, %v903_v14 }
 0x19d   :  { %v938_v47 = vpack.c.bf16 %v906_v23, %v904_v55 }
 0x19f   :  { %1325 = vmatprep.mubr.bf16.mxu1 %v938_v47 }
 0x1a0   :  { %1326 = vmatmul.mubr.bf16.gmra.mrb[92].mxu1 %v937_v46 }
 0x1f9   :  { %v1177_v24 = vpop.f32.mrb[32].mxu1 }
 0x1fa   :  { %v1178_v1 = vadd.f32 %v1177_v24, %v2389_v60  ;;  %v1179_v48 = vpop.f32.mrb[33].mxu1 }
 0x1fb   :  { %v1180_v50 = vadd.f32 %v1179_v48, %v2392_v36  ;;  %v1181_v25 = vpop.f32.mrb[34].mxu1 }
 0x1fc   :  { %v1336_v53 = vmax.f32 %v1178_v1, 0.0  ;;  %v1182_v15 = vadd.f32 %v1181_v25, %v2389_v60  ;;  %v1183_v26 = vpop.f32.mrb[35].mxu1 }
 0x1fd   :  { %v1337_v54 = vmax.f32 %v1180_v50, 0.0  ;;  %v1184_v8 = vadd.f32 %v1183_v26, %v2392_v36 }
 0x1fe   :  { %v1338_v16 = vmax.f32 %v1182_v15, 0.0  ;;  %v1412_v56 = vmul.f32 %v2399_v49, %v1336_v53 }
 0x1ff   :  { %v1339_v58 = vmax.f32 %v1184_v8, 0.0  ;;  %v1413_v33 = vmul.f32 %v2403_v51, %v1337_v54 }
 0x200   :  { %v1414_v29 = vmul.f32 %v2399_v49, %v1338_v16 }
 0x201   :  { %v1415_v9 = vmul.f32 %v2403_v51, %v1339_v58  ;;  %v1187_v59 = vpop.f32.mrb[36].mxu1  ;;  %v1476_v35 = vadd.f32 %v1413_v33, %v1412_v56 }
 0x202   :  { %v1188_v30 = vadd.f32 %v1187_v59, %v2389_v60  ;;  %v1189_v17 = vpop.f32.mrb[37].mxu1 }
 0x203   :  { %v1190_v61 = vadd.f32 %v1189_v17, %v2392_v36  ;;  %1477 = vadd.xlane.f32.xlu0 %v1476_v35  ;;  %v1191_v62 = vpop.f32.mrb[38].mxu1  ;;  %v1479_v63 = vadd.f32 %v1415_v9, %v1414_v29 }
 0x204   :  { %v1340_v31 = vmax.f32 %v1188_v30, 0.0  ;;  %v1192_v18 = vadd.f32 %v1191_v62, %v2389_v60  ;;  %v1193_v10 = vpop.f32.mrb[39].mxu1 }
 0x205   :  { %v1341_v0 = vmax.f32 %v1190_v61, 0.0  ;;  %v1194_v32 = vadd.f32 %v1193_v10, %v2392_v36 }
 0x206   :  { %v1342_v2 = vmax.f32 %v1192_v18, 0.0  ;;  %v1416_v3 = vmul.f32 %v2399_v49, %v1340_v31 }
 0x207   :  { %v1343_v11 = vmax.f32 %v1194_v32, 0.0  ;;  %1480 = vadd.xlane.f32.xlu0 %v1479_v63  ;;  %v1417_v19 = vmul.f32 %v2403_v51, %v1341_v0 }
 0x208   :  { %v1418_v4 = vmul.f32 %v2399_v49, %v1342_v2 }
 0x209   :  { %v1419_v37 = vmul.f32 %v2403_v51, %v1343_v11  ;;  %v1197_v5 = vpop.f32.mrb[40].mxu1  ;;  %v1482_v20 = vadd.f32 %v1417_v19, %v1416_v3 }
 0x20a   :  { %v1198_v39 = vadd.f32 %v1197_v5, %v2389_v60  ;;  %v1199_v6 = vpop.f32.mrb[41].mxu1 }
 0x20b   :  { %v1200_v7 = vadd.f32 %v1199_v6, %v2392_v36  ;;  %1483 = vadd.xlane.f32.xlu1 %v1482_v20  ;;  %v1201_v12 = vpop.f32.mrb[42].mxu1  ;;  %v1485_v27 = vadd.f32 %v1419_v37, %v1418_v4 }
 0x20c   :  { %v1344_v40 = vmax.f32 %v1198_v39, 0.0  ;;  %v1202_v21 = vadd.f32 %v1201_v12, %v2389_v60  ;;  %v1203_v28 = vpop.f32.mrb[43].mxu1 }
 0x20d   :  { %v1345_v13 = vmax.f32 %v1200_v7, 0.0  ;;  %v1204_v42 = vadd.f32 %v1203_v28, %v2392_v36 }
 0x20e   :  { %v1420_v34 = vmul.f32 %v2399_v49, %v1344_v40  ;;  %v1346_v22 = vmax.f32 %v1202_v21, 0.0 }
 0x20f   :  { %v1421_v41 = vmul.f32 %v2403_v51, %v1345_v13  ;;  %v1347_v43 = vmax.f32 %v1204_v42, 0.0  ;;  %1486 = vadd.xlane.f32.xlu1 %v1485_v27 }
 0x210   :  { %v1422_v44 = vmul.f32 %v2399_v49, %v1346_v22 }
 0x211   :  { %v1423_v52 = vmul.f32 %v2403_v51, %v1347_v43  ;;  %v1207_v14 = vpop.f32.mrb[44].mxu1  ;;  %v1488_v45 = vadd.f32 %v1421_v41, %v1420_v34 }
 0x212   :  { %v1208_v55 = vadd.f32 %v1207_v14, %v2389_v60  ;;  %v1209_v23 = vpop.f32.mrb[45].mxu1 }
 0x213   :  { %v1210_v46 = vadd.f32 %v1209_v23, %v2392_v36  ;;  %1489 = vadd.xlane.f32.xlu0 %v1488_v45  ;;  %v1211_v47 = vpop.f32.mrb[46].mxu1  ;;  %v1491_v57 = vadd.f32 %v1423_v52, %v1422_v44 }
 0x214   :  { %v1348_v38 = vmax.f32 %v1208_v55, 0.0  ;;  %v1212_v24 = vadd.f32 %v1211_v47, %v2389_v60  ;;  %v1213_v1 = vpop.f32.mrb[47].mxu1 }
 0x215   :  { %v1349_v48 = vmax.f32 %v1210_v46, 0.0  ;;  %v1214_v50 = vadd.f32 %v1213_v1, %v2392_v36  ;;  %1492 = vadd.xlane.f32.xlu1 %v1491_v57 }
 0x216   :  { %v1424_v25 = vmul.f32 %v2399_v49, %v1348_v38  ;;  %v1350_v53 = vmax.f32 %v1212_v24, 0.0 }
 0x217   :  { %v1425_v15 = vmul.f32 %v2403_v51, %v1349_v48  ;;  %v1351_v26 = vmax.f32 %v1214_v50, 0.0 }
 0x218   :  { %v1426_v54 = vmul.f32 %v2399_v49, %v1350_v53 }
 0x219   :  { %v1427_v8 = vmul.f32 %v2403_v51, %v1351_v26  ;;  %v1217_v16 = vpop.f32.mrb[48].mxu1  ;;  %v1494_v56 = vadd.f32 %v1425_v15, %v1424_v25 }
 0x21a   :  { %v1218_v58 = vadd.f32 %v1217_v16, %v2389_v60  ;;  %v1219_v33 = vpop.f32.mrb[49].mxu1 }
 0x21b   :  { %v1220_v29 = vadd.f32 %v1219_v33, %v2392_v36  ;;  %1495 = vadd.xlane.f32.xlu0 %v1494_v56  ;;  %v1221_v9 = vpop.f32.mrb[50].mxu1  ;;  %v1497_v59 = vadd.f32 %v1427_v8, %v1426_v54 }
 0x21c   :  { %v1352_v35 = vmax.f32 %v1218_v58, 0.0  ;;  %v1222_v30 = vadd.f32 %v1221_v9, %v2389_v60  ;;  %v1223_v17 = vpop.f32.mrb[51].mxu1 }
 0x21d   :  { %v1353_v61 = vmax.f32 %v1220_v29, 0.0  ;;  %v1224_v62 = vadd.f32 %v1223_v17, %v2392_v36  ;;  %1498 = vadd.xlane.f32.xlu1 %v1497_v59 }
 0x21e   :  { %v1428_v63 = vmul.f32 %v2399_v49, %v1352_v35  ;;  %v1354_v31 = vmax.f32 %v1222_v30, 0.0 }
 0x21f   :  { %v1429_v18 = vmul.f32 %v2403_v51, %v1353_v61  ;;  %v1355_v10 = vmax.f32 %v1224_v62, 0.0 }
 0x220   :  { %v1430_v0 = vmul.f32 %v2399_v49, %v1354_v31 }
 0x221   :  { %v1431_v32 = vmul.f32 %v2403_v51, %v1355_v10  ;;  %v1227_v2 = vpop.f32.mrb[52].mxu1  ;;  %v1500_v3 = vadd.f32 %v1429_v18, %v1428_v63 }
 0x222   :  { %v1228_v11 = vadd.f32 %v1227_v2, %v2389_v60  ;;  %v1229_v19 = vpop.f32.mrb[53].mxu1 }
 0x223   :  { %v1230_v4 = vadd.f32 %v1229_v19, %v2392_v36  ;;  %1501 = vadd.xlane.f32.xlu0 %v1500_v3  ;;  %v1231_v37 = vpop.f32.mrb[54].mxu1  ;;  %v1503_v5 = vadd.f32 %v1431_v32, %v1430_v0 }
 0x224   :  { %v1356_v20 = vmax.f32 %v1228_v11, 0.0  ;;  %v1232_v39 = vadd.f32 %v1231_v37, %v2389_v60  ;;  %v1233_v6 = vpop.f32.mrb[55].mxu1 }
 0x225   :  { %v1357_v7 = vmax.f32 %v1230_v4, 0.0  ;;  %v1234_v12 = vadd.f32 %v1233_v6, %v2392_v36  ;;  %1504 = vadd.xlane.f32.xlu1 %v1503_v5 }
 0x226   :  { %v1432_v27 = vmul.f32 %v2399_v49, %v1356_v20  ;;  %v1358_v40 = vmax.f32 %v1232_v39, 0.0 }
 0x227   :  { %v1433_v21 = vmul.f32 %v2403_v51, %v1357_v7  ;;  %v1359_v28 = vmax.f32 %v1234_v12, 0.0 }
 0x228   :  { %v1434_v13 = vmul.f32 %v2399_v49, %v1358_v40 }
 0x229   :  { %v1435_v42 = vmul.f32 %v2403_v51, %v1359_v28  ;;  %v1237_v34 = vpop.f32.mrb[56].mxu1  ;;  %v1506_v22 = vadd.f32 %v1433_v21, %v1432_v27 }
 0x22a   :  { %v1238_v41 = vadd.f32 %v1237_v34, %v2389_v60  ;;  %v1239_v43 = vpop.f32.mrb[57].mxu1 }
 0x22b   :  { %v1240_v44 = vadd.f32 %v1239_v43, %v2392_v36  ;;  %1507 = vadd.xlane.f32.xlu0 %v1506_v22  ;;  %v1241_v52 = vpop.f32.mrb[58].mxu1  ;;  %v1509_v14 = vadd.f32 %v1435_v42, %v1434_v13 }
 0x22c   :  { %v1360_v45 = vmax.f32 %v1238_v41, 0.0  ;;  %v1242_v55 = vadd.f32 %v1241_v52, %v2389_v60  ;;  %v1243_v23 = vpop.f32.mrb[59].mxu1 }
 0x22d   :  { %v1361_v46 = vmax.f32 %v1240_v44, 0.0  ;;  %v1244_v47 = vadd.f32 %v1243_v23, %v2392_v36  ;;  %1510 = vadd.xlane.f32.xlu1 %v1509_v14 }
 0x22e   :  { %v1436_v57 = vmul.f32 %v2399_v49, %v1360_v45  ;;  %v1362_v38 = vmax.f32 %v1242_v55, 0.0 }
 0x22f   :  { %v1437_v24 = vmul.f32 %v2403_v51, %v1361_v46  ;;  %v1363_v1 = vmax.f32 %v1244_v47, 0.0 }
 0x230   :  { %v1438_v48 = vmul.f32 %v2399_v49, %v1362_v38 }
 0x231   :  { %v1439_v50 = vmul.f32 %v2403_v51, %v1363_v1  ;;  %v1247_v25 = vpop.f32.mrb[60].mxu1  ;;  %v1512_v53 = vadd.f32 %v1437_v24, %v1436_v57 }
 0x232   :  { %v1248_v15 = vadd.f32 %v1247_v25, %v2389_v60  ;;  %v1249_v26 = vpop.f32.mrb[61].mxu1 }
 0x233   :  { %v1250_v54 = vadd.f32 %v1249_v26, %v2392_v36  ;;  %1513 = vadd.xlane.f32.xlu0 %v1512_v53  ;;  %v1251_v8 = vpop.f32.mrb[62].mxu1  ;;  %v1515_v16 = vadd.f32 %v1439_v50, %v1438_v48 }
 0x234   :  { %v1364_v56 = vmax.f32 %v1248_v15, 0.0  ;;  %v1252_v58 = vadd.f32 %v1251_v8, %v2389_v60  ;;  %v1253_v33 = vpop.f32.mrb[63].mxu1 }
 0x235   :  { %v1365_v29 = vmax.f32 %v1250_v54, 0.0  ;;  %v1254_v9 = vadd.f32 %v1253_v33, %v2392_v36  ;;  %1516 = vadd.xlane.f32.xlu1 %v1515_v16 }
 0x236   :  { %v1440_v59 = vmul.f32 %v2399_v49, %v1364_v56  ;;  %v1366_v35 = vmax.f32 %v1252_v58, 0.0 }
 0x237   :  { %v1441_v30 = vmul.f32 %v2403_v51, %v1365_v29  ;;  %v1367_v17 = vmax.f32 %v1254_v9, 0.0 }
 0x238   :  { %v1442_v61 = vmul.f32 %v2399_v49, %v1366_v35 }
 0x239   :  { %v1443_v62 = vmul.f32 %v2403_v51, %v1367_v17  ;;  %v1518_v63 = vadd.f32 %v1441_v30, %v1440_v59 }
 0x23b   :  { %1519 = vadd.xlane.f32.xlu0 %v1518_v63  ;;  %v1257_v31 = vpop.f32.mrb[64].mxu1  ;;  %v1521_v18 = vadd.f32 %v1443_v62, %v1442_v61 }
 0x23c   :  { %v1258_v10 = vadd.f32 %v1257_v31, %v2389_v60  ;;  %v1259_v0 = vpop.f32.mrb[65].mxu1 }
 0x23d   :  { %v1260_v32 = vadd.f32 %v1259_v0, %v2392_v36  ;;  %1522 = vadd.xlane.f32.xlu1 %v1521_v18  ;;  %v1261_v2 = vpop.f32.mrb[66].mxu1 }
 0x23e   :  { %v1368_v3 = vmax.f32 %v1258_v10, 0.0  ;;  %v1262_v11 = vadd.f32 %v1261_v2, %v2389_v60  ;;  %v1263_v19 = vpop.f32.mrb[67].mxu1 }
 0x23f   :  { %v1369_v4 = vmax.f32 %v1260_v32, 0.0  ;;  %v1264_v37 = vadd.f32 %v1263_v19, %v2392_v36 }
 0x240   :  { %v1444_v5 = vmul.f32 %v2399_v49, %v1368_v3  ;;  %v1370_v20 = vmax.f32 %v1262_v11, 0.0 }
 0x241   :  { %v1445_v39 = vmul.f32 %v2403_v51, %v1369_v4  ;;  %v1371_v6 = vmax.f32 %v1264_v37, 0.0 }
 0x242   :  { %v1446_v7 = vmul.f32 %v2399_v49, %v1370_v20 }
 0x243   :  { %v1447_v12 = vmul.f32 %v2403_v51, %v1371_v6  ;;  %v1267_v27 = vpop.f32.mrb[68].mxu1  ;;  %v1524_v40 = vadd.f32 %v1445_v39, %v1444_v5 }
 0x244   :  { %v1268_v21 = vadd.f32 %v1267_v27, %v2389_v60  ;;  %v1269_v28 = vpop.f32.mrb[69].mxu1 }
 0x245   :  { %v1270_v13 = vadd.f32 %v1269_v28, %v2392_v36  ;;  %v1271_v42 = vpop.f32.mrb[70].mxu1  ;;  %1525 = vadd.xlane.f32.xlu0 %v1524_v40  ;;  %v1527_v34 = vadd.f32 %v1447_v12, %v1446_v7 }
 0x246   :  { %v1372_v22 = vmax.f32 %v1268_v21, 0.0  ;;  %v1272_v41 = vadd.f32 %v1271_v42, %v2389_v60  ;;  %v1273_v43 = vpop.f32.mrb[71].mxu1 }
 0x247   :  { %v1373_v44 = vmax.f32 %v1270_v13, 0.0  ;;  %v1274_v52 = vadd.f32 %v1273_v43, %v2392_v36  ;;  %1528 = vadd.xlane.f32.xlu1 %v1527_v34 }
 0x248   :  { %v1448_v14 = vmul.f32 %v2399_v49, %v1372_v22  ;;  %v1374_v45 = vmax.f32 %v1272_v41, 0.0 }
 0x249   :  { %v1449_v55 = vmul.f32 %v2403_v51, %v1373_v44  ;;  %v1375_v23 = vmax.f32 %v1274_v52, 0.0 }
 0x24a   :  { %v1450_v46 = vmul.f32 %v2399_v49, %v1374_v45 }
 0x24b   :  { %v1451_v47 = vmul.f32 %v2403_v51, %v1375_v23  ;;  %v1277_v57 = vpop.f32.mrb[72].mxu1  ;;  %v1530_v38 = vadd.f32 %v1449_v55, %v1448_v14 }
 0x24c   :  { %v1278_v24 = vadd.f32 %v1277_v57, %v2389_v60  ;;  %v1279_v1 = vpop.f32.mrb[73].mxu1 }
 0x24d   :  { %v1280_v48 = vadd.f32 %v1279_v1, %v2392_v36  ;;  %v1281_v50 = vpop.f32.mrb[74].mxu1  ;;  %1531 = vadd.xlane.f32.xlu0 %v1530_v38  ;;  %v1533_v25 = vadd.f32 %v1451_v47, %v1450_v46 }
 0x24e   :  { %v1376_v53 = vmax.f32 %v1278_v24, 0.0  ;;  %v1282_v15 = vadd.f32 %v1281_v50, %v2389_v60  ;;  %v1283_v26 = vpop.f32.mrb[75].mxu1 }
 0x24f   :  { %v1377_v54 = vmax.f32 %v1280_v48, 0.0  ;;  %v1284_v8 = vadd.f32 %v1283_v26, %v2392_v36  ;;  %1534 = vadd.xlane.f32.xlu1 %v1533_v25 }
 0x250   :  { %v1452_v16 = vmul.f32 %v2399_v49, %v1376_v53  ;;  %v1378_v56 = vmax.f32 %v1282_v15, 0.0 }
 0x251   :  { %v1453_v58 = vmul.f32 %v2403_v51, %v1377_v54  ;;  %v1379_v33 = vmax.f32 %v1284_v8, 0.0 }
 0x252   :  { %v1454_v29 = vmul.f32 %v2399_v49, %v1378_v56 }
 0x253   :  { %v1455_v9 = vmul.f32 %v2403_v51, %v1379_v33  ;;  %v1287_v59 = vpop.f32.mrb[76].mxu1  ;;  %v1536_v35 = vadd.f32 %v1453_v58, %v1452_v16 }
 0x254   :  { %v1288_v30 = vadd.f32 %v1287_v59, %v2389_v60  ;;  %v1289_v17 = vpop.f32.mrb[77].mxu1 }
 0x255   :  { %v1290_v61 = vadd.f32 %v1289_v17, %v2392_v36  ;;  %v1291_v62 = vpop.f32.mrb[78].mxu1  ;;  %1537 = vadd.xlane.f32.xlu0 %v1536_v35  ;;  %v1539_v63 = vadd.f32 %v1455_v9, %v1454_v29 }
 0x256   :  { %v1380_v31 = vmax.f32 %v1288_v30, 0.0  ;;  %v1292_v18 = vadd.f32 %v1291_v62, %v2389_v60  ;;  %v1293_v10 = vpop.f32.mrb[79].mxu1 }
 0x257   :  { %v1381_v0 = vmax.f32 %v1290_v61, 0.0  ;;  %v1294_v32 = vadd.f32 %v1293_v10, %v2392_v36  ;;  %1540 = vadd.xlane.f32.xlu1 %v1539_v63 }
 0x258   :  { %v1456_v2 = vmul.f32 %v2399_v49, %v1380_v31  ;;  %v1382_v3 = vmax.f32 %v1292_v18, 0.0 }
 0x259   :  { %v1457_v11 = vmul.f32 %v2403_v51, %v1381_v0  ;;  %v1383_v19 = vmax.f32 %v1294_v32, 0.0 }
 0x25a   :  { %v1458_v4 = vmul.f32 %v2399_v49, %v1382_v3 }
 0x25b   :  { %v1459_v37 = vmul.f32 %v2403_v51, %v1383_v19  ;;  %v1297_v5 = vpop.f32.mrb[80].mxu1  ;;  %v1542_v20 = vadd.f32 %v1457_v11, %v1456_v2 }
 0x25c   :  { %v1298_v39 = vadd.f32 %v1297_v5, %v2389_v60  ;;  %v1299_v6 = vpop.f32.mrb[81].mxu1 }
 0x25d   :  { %v1300_v7 = vadd.f32 %v1299_v6, %v2392_v36  ;;  %v1301_v12 = vpop.f32.mrb[82].mxu1  ;;  %1543 = vadd.xlane.f32.xlu0 %v1542_v20  ;;  %v1545_v27 = vadd.f32 %v1459_v37, %v1458_v4 }
 0x25e   :  { %v1384_v40 = vmax.f32 %v1298_v39, 0.0  ;;  %v1302_v21 = vadd.f32 %v1301_v12, %v2389_v60  ;;  %v1303_v28 = vpop.f32.mrb[83].mxu1 }
 0x25f   :  { %v1385_v13 = vmax.f32 %v1300_v7, 0.0  ;;  %v1304_v42 = vadd.f32 %v1303_v28, %v2392_v36  ;;  %1546 = vadd.xlane.f32.xlu1 %v1545_v27 }
 0x260   :  { %v1460_v34 = vmul.f32 %v2399_v49, %v1384_v40  ;;  %v1386_v22 = vmax.f32 %v1302_v21, 0.0 }
 0x261   :  { %v1461_v41 = vmul.f32 %v2403_v51, %v1385_v13  ;;  %v1387_v43 = vmax.f32 %v1304_v42, 0.0 }
 0x262   :  { %v1462_v44 = vmul.f32 %v2399_v49, %v1386_v22 }
 0x263   :  { %v1463_v52 = vmul.f32 %v2403_v51, %v1387_v43  ;;  %v1307_v14 = vpop.f32.mrb[84].mxu1  ;;  %v1548_v45 = vadd.f32 %v1461_v41, %v1460_v34 }
 0x264   :  { %v1308_v55 = vadd.f32 %v1307_v14, %v2389_v60  ;;  %v1309_v23 = vpop.f32.mrb[85].mxu1 }
 0x265   :  { %v1310_v46 = vadd.f32 %v1309_v23, %v2392_v36  ;;  %v1311_v47 = vpop.f32.mrb[86].mxu1  ;;  %1549 = vadd.xlane.f32.xlu0 %v1548_v45  ;;  %v1551_v57 = vadd.f32 %v1463_v52, %v1462_v44 }
 0x266   :  { %v1388_v38 = vmax.f32 %v1308_v55, 0.0  ;;  %v1312_v24 = vadd.f32 %v1311_v47, %v2389_v60  ;;  %v1313_v1 = vpop.f32.mrb[87].mxu1 }
 0x267   :  { %v1389_v48 = vmax.f32 %v1310_v46, 0.0  ;;  %v1314_v50 = vadd.f32 %v1313_v1, %v2392_v36  ;;  %1552 = vadd.xlane.f32.xlu1 %v1551_v57 }
 0x268   :  { %v1464_v25 = vmul.f32 %v2399_v49, %v1388_v38  ;;  %v1390_v53 = vmax.f32 %v1312_v24, 0.0 }
 0x269   :  { %v1465_v15 = vmul.f32 %v2403_v51, %v1389_v48  ;;  %v1391_v26 = vmax.f32 %v1314_v50, 0.0 }
 0x26a   :  { %v1466_v54 = vmul.f32 %v2399_v49, %v1390_v53 }
 0x26b   :  { %v1467_v8 = vmul.f32 %v2403_v51, %v1391_v26  ;;  %v1317_v16 = vpop.f32.mrb[88].mxu1  ;;  %v1554_v56 = vadd.f32 %v1465_v15, %v1464_v25 }
 0x26c   :  { %v1318_v58 = vadd.f32 %v1317_v16, %v2389_v60  ;;  %v1319_v33 = vpop.f32.mrb[89].mxu1 }
 0x26d   :  { %v1320_v29 = vadd.f32 %v1319_v33, %v2392_v36  ;;  %v1321_v9 = vpop.f32.mrb[90].mxu1  ;;  %1555 = vadd.xlane.f32.xlu0 %v1554_v56  ;;  %v1557_v59 = vadd.f32 %v1467_v8, %v1466_v54 }
 0x26e   :  { %v1392_v35 = vmax.f32 %v1318_v58, 0.0  ;;  %v1322_v30 = vadd.f32 %v1321_v9, %v2389_v60  ;;  %v1323_v17 = vpop.f32.mrb[91].mxu1 }
 0x26f   :  { %v1393_v61 = vmax.f32 %v1320_v29, 0.0  ;;  %v1324_v62 = vadd.f32 %v1323_v17, %v2392_v36  ;;  %1558 = vadd.xlane.f32.xlu1 %v1557_v59 }
 0x270   :  { %v1468_v63 = vmul.f32 %v2399_v49, %v1392_v35  ;;  %v1394_v31 = vmax.f32 %v1322_v30, 0.0 }
 0x271   :  { %v1469_v18 = vmul.f32 %v2403_v51, %v1393_v61  ;;  %v1395_v10 = vmax.f32 %v1324_v62, 0.0 }
 0x272   :  { %v1470_v0 = vmul.f32 %v2399_v49, %v1394_v31 }
 0x273   :  { %v1471_v32 = vmul.f32 %v2403_v51, %v1395_v10  ;;  %v1327_v2 = vpop.f32.mrb[92].mxu1  ;;  %v1560_v3 = vadd.f32 %v1469_v18, %v1468_v63 }
 0x274   :  { %v1328_v11 = vadd.f32 %v1327_v2, %v2389_v60  ;;  %v1329_v19 = vpop.f32.mrb[93].mxu1 }
 0x275   :  { %v1330_v4 = vadd.f32 %v1329_v19, %v2392_v36  ;;  %v1331_v37 = vpop.f32.mrb[94].mxu1  ;;  %1561 = vadd.xlane.f32.xlu0 %v1560_v3  ;;  %v1563_v5 = vadd.f32 %v1471_v32, %v1470_v0 }
 0x276   :  { %v1396_v20 = vmax.f32 %v1328_v11, 0.0  ;;  %v1332_v39 = vadd.f32 %v1331_v37, %v2389_v60  ;;  %v1333_v6 = vpop.f32.mrb[95].mxu1  ;;  %v2534_v60 = vstv %s2704_s8 }
 0x277   :  { %v1397_v7 = vmax.f32 %v1330_v4, 0.0  ;;  %v1334_v12 = vadd.f32 %v1333_v6, %v2392_v36  ;;  %1564 = vadd.xlane.f32.xlu1 %v1563_v5 }
 0x278   :  { %v1472_v27 = vmul.f32 %v2399_v49, %v1396_v20  ;;  %v1398_v40 = vmax.f32 %v1332_v39, 0.0 }
 0x279   :  { %v1473_v21 = vmul.f32 %v2403_v51, %v1397_v7  ;;  %v1399_v28 = vmax.f32 %v1334_v12, 0.0 }
 0x27a   :  { %v1474_v13 = vmul.f32 %v2399_v49, %v1398_v40 }
 0x27b   :  { %v1475_v42 = vmul.f32 %v2403_v51, %v1399_v28  ;;  %v1566_v34 = vadd.f32 %v1473_v21, %v1472_v27 }
 0x27d   :  { %1567 = vadd.xlane.f32.xlu0 %v1566_v34  ;;  %v1569_v22 = vadd.f32 %v1475_v42, %v1474_v13 }
 0x27f   :  { %1570 = vadd.xlane.f32.xlu1 %v1569_v22 }
 0x290   :  { %v1478_v36 = vpop.xlane.xlu0 %1477 }
 0x291   :  { %v1574_v41 = vadd.f32 %v2534_v60, %v1478_v36 }
 0x293   :  { %1607 = vst.msk [vmem:[%s2705_s9] sm:$0xff] %vm1606_vm3, %v1574_v41 }
 0x294   :  { %v1481_v49 = vpop.xlane.xlu0 %1480 }
 0x295   :  { %v1575_v51 = vadd.f32 %v2534_v60, %v1481_v49 }
 0x297   :  { %1608 = vst.msk [vmem:[%s2705_s9 + $0x8] sm:$0xff] %vm1606_vm3, %v1575_v51 }
 0x298   :  { %v1484_v43 = vpop.xlane.xlu1 %1483 }
 0x299   :  { %v1576_v44 = vadd.f32 %v2534_v60, %v1484_v43 }
 0x29b   :  { %1609 = vst.msk [vmem:[%s2705_s9 + $0x10] sm:$0xff] %vm1606_vm3, %v1576_v44 }
 0x29c   :  { %v1487_v52 = vpop.xlane.xlu1 %1486 }
 0x29d   :  { %v1577_v14 = vadd.f32 %v2534_v60, %v1487_v52 }
 0x29f   :  { %1610 = vst.msk [vmem:[%s2705_s9 + $0x18] sm:$0xff] %vm1606_vm3, %v1577_v14 }
 0x2a0   :  { %v1490_v45 = vpop.xlane.xlu0 %1489 }
 0x2a1   :  { %v1578_v55 = vadd.f32 %v2534_v60, %v1490_v45 }
 0x2a2   :  { %v1493_v23 = vpop.xlane.xlu1 %1492 }
 0x2a3   :  { %1611 = vst.msk [vmem:[%s2705_s9 + $0x20] sm:$0xff] %vm1606_vm3, %v1578_v55  ;;  %v1579_v46 = vadd.f32 %v2534_v60, %v1493_v23 }
 0x2a5   :  { %1612 = vst.msk [vmem:[%s2705_s9 + $0x28] sm:$0xff] %vm1606_vm3, %v1579_v46 }
 0x2a8   :  { %v1496_v47 = vpop.xlane.xlu0 %1495 }
 0x2a9   :  { %v1580_v57 = vadd.f32 %v2534_v60, %v1496_v47 }
 0x2aa   :  { %v1499_v38 = vpop.xlane.xlu1 %1498 }
 0x2ab   :  { %1613 = vst.msk [vmem:[%s2705_s9 + $0x30] sm:$0xff] %vm1606_vm3, %v1580_v57  ;;  %v1581_v24 = vadd.f32 %v2534_v60, %v1499_v38 }
 0x2ad   :  { %1614 = vst.msk [vmem:[%s2705_s9 + $0x38] sm:$0xff] %vm1606_vm3, %v1581_v24 }
 0x2b0   :  { %v1502_v1 = vpop.xlane.xlu0 %1501 }
 0x2b1   :  { %v1582_v48 = vadd.f32 %v2534_v60, %v1502_v1 }
 0x2b2   :  { %v1505_v50 = vpop.xlane.xlu1 %1504 }
 0x2b3   :  { %1615 = vst.msk [vmem:[%s2705_s9 + $0x40] sm:$0xff] %vm1606_vm3, %v1582_v48  ;;  %v1583_v25 = vadd.f32 %v2534_v60, %v1505_v50 }
 0x2b5   :  { %1616 = vst.msk [vmem:[%s2705_s9 + $0x48] sm:$0xff] %vm1606_vm3, %v1583_v25 }
 0x2b8   :  { %v1508_v53 = vpop.xlane.xlu0 %1507 }
 0x2b9   :  { %v1584_v15 = vadd.f32 %v2534_v60, %v1508_v53 }
 0x2ba   :  { %v1511_v26 = vpop.xlane.xlu1 %1510 }
 0x2bb   :  { %1617 = vst.msk [vmem:[%s2705_s9 + $0x50] sm:$0xff] %vm1606_vm3, %v1584_v15  ;;  %v1585_v54 = vadd.f32 %v2534_v60, %v1511_v26 }
 0x2bd   :  { %1618 = vst.msk [vmem:[%s2705_s9 + $0x58] sm:$0xff] %vm1606_vm3, %v1585_v54 }
 0x2c0   :  { %v1514_v8 = vpop.xlane.xlu0 %1513 }
 0x2c1   :  { %v1586_v16 = vadd.f32 %v2534_v60, %v1514_v8 }
 0x2c2   :  { %v1517_v56 = vpop.xlane.xlu1 %1516 }
 0x2c3   :  { %1619 = vst.msk [vmem:[%s2705_s9 + $0x60] sm:$0xff] %vm1606_vm3, %v1586_v16  ;;  %v1587_v58 = vadd.f32 %v2534_v60, %v1517_v56 }
 0x2c5   :  { %1620 = vst.msk [vmem:[%s2705_s9 + $0x68] sm:$0xff] %vm1606_vm3, %v1587_v58 }
 0x2c8   :  { %v1520_v33 = vpop.xlane.xlu0 %1519 }
 0x2c9   :  { %v1588_v29 = vadd.f32 %v2534_v60, %v1520_v33 }
 0x2ca   :  { %v1523_v9 = vpop.xlane.xlu1 %1522 }
 0x2cb   :  { %1621 = vst.msk [vmem:[%s2705_s9 + $0x70] sm:$0xff] %vm1606_vm3, %v1588_v29  ;;  %v1589_v59 = vadd.f32 %v2534_v60, %v1523_v9 }
 0x2cd   :  { %1622 = vst.msk [vmem:[%s2705_s9 + $0x78] sm:$0xff] %vm1606_vm3, %v1589_v59 }
 0x2d2   :  { %v1526_v35 = vpop.xlane.xlu0 %1525 }
 0x2d3   :  { %v1590_v30 = vadd.f32 %v2534_v60, %v1526_v35 }
 0x2d4   :  { %v1529_v17 = vpop.xlane.xlu1 %1528 }
 0x2d5   :  { %1623 = vst.msk [vmem:[%s2705_s9 + $0x80] sm:$0xff] %vm1606_vm3, %v1590_v30  ;;  %v1591_v61 = vadd.f32 %v2534_v60, %v1529_v17 }
 0x2d7   :  { %1624 = vst.msk [vmem:[%s2705_s9 + $0x88] sm:$0xff] %vm1606_vm3, %v1591_v61 }
 0x2da   :  { %v1532_v62 = vpop.xlane.xlu0 %1531 }
 0x2db   :  { %v1592_v63 = vadd.f32 %v2534_v60, %v1532_v62 }
 0x2dc   :  { %v1535_v31 = vpop.xlane.xlu1 %1534 }
 0x2dd   :  { %1625 = vst.msk [vmem:[%s2705_s9 + $0x90] sm:$0xff] %vm1606_vm3, %v1592_v63  ;;  %v1593_v18 = vadd.f32 %v2534_v60, %v1535_v31 }
 0x2df   :  { %1626 = vst.msk [vmem:[%s2705_s9 + $0x98] sm:$0xff] %vm1606_vm3, %v1593_v18 }
 0x2e2   :  { %v1538_v10 = vpop.xlane.xlu0 %1537 }
 0x2e3   :  { %v1594_v0 = vadd.f32 %v2534_v60, %v1538_v10 }
 0x2e4   :  { %v1541_v32 = vpop.xlane.xlu1 %1540 }
 0x2e5   :  { %1627 = vst.msk [vmem:[%s2705_s9 + $0xa0] sm:$0xff] %vm1606_vm3, %v1594_v0  ;;  %v1595_v2 = vadd.f32 %v2534_v60, %v1541_v32 }
 0x2e7   :  { %1628 = vst.msk [vmem:[%s2705_s9 + $0xa8] sm:$0xff] %vm1606_vm3, %v1595_v2 }
 0x2ea   :  { %v1544_v3 = vpop.xlane.xlu0 %1543 }
 0x2eb   :  { %v1596_v11 = vadd.f32 %v2534_v60, %v1544_v3 }
 0x2ec   :  { %v1547_v19 = vpop.xlane.xlu1 %1546 }
 0x2ed   :  { %1629 = vst.msk [vmem:[%s2705_s9 + $0xb0] sm:$0xff] %vm1606_vm3, %v1596_v11  ;;  %v1597_v4 = vadd.f32 %v2534_v60, %v1547_v19 }
 0x2ef   :  { %1630 = vst.msk [vmem:[%s2705_s9 + $0xb8] sm:$0xff] %vm1606_vm3, %v1597_v4 }
 0x2f2   :  { %v1550_v37 = vpop.xlane.xlu0 %1549 }
 0x2f3   :  { %v1598_v5 = vadd.f32 %v2534_v60, %v1550_v37 }
 0x2f4   :  { %v1553_v20 = vpop.xlane.xlu1 %1552 }
 0x2f5   :  { %1631 = vst.msk [vmem:[%s2705_s9 + $0xc0] sm:$0xff] %vm1606_vm3, %v1598_v5  ;;  %v1599_v39 = vadd.f32 %v2534_v60, %v1553_v20 }
 0x2f7   :  { %1632 = vst.msk [vmem:[%s2705_s9 + $0xc8] sm:$0xff] %vm1606_vm3, %v1599_v39 }
 0x2fa   :  { %v1556_v6 = vpop.xlane.xlu0 %1555 }
 0x2fb   :  { %v1600_v7 = vadd.f32 %v2534_v60, %v1556_v6 }
 0x2fc   :  { %v1559_v12 = vpop.xlane.xlu1 %1558 }
 0x2fd   :  { %1633 = vst.msk [vmem:[%s2705_s9 + $0xd0] sm:$0xff] %vm1606_vm3, %v1600_v7  ;;  %v1601_v27 = vadd.f32 %v2534_v60, %v1559_v12 }
 0x2ff   :  { %1634 = vst.msk [vmem:[%s2705_s9 + $0xd8] sm:$0xff] %vm1606_vm3, %v1601_v27 }
 0x302   :  { %v1562_v40 = vpop.xlane.xlu0 %1561 }
 0x303   :  { %v1602_v21 = vadd.f32 %v2534_v60, %v1562_v40 }
 0x304   :  { %v1565_v28 = vpop.xlane.xlu1 %1564 }
 0x305   :  { %1635 = vst.msk [vmem:[%s2705_s9 + $0xe0] sm:$0xff] %vm1606_vm3, %v1602_v21  ;;  %v1603_v13 = vadd.f32 %v2534_v60, %v1565_v28 }
 0x307   :  { %1636 = vst.msk [vmem:[%s2705_s9 + $0xe8] sm:$0xff] %vm1606_vm3, %v1603_v13 }
 0x30a   :  { %v1568_v42 = vpop.xlane.xlu0 %1567 }
 0x30b   :  { %v1604_v34 = vadd.f32 %v2534_v60, %v1568_v42 }
 0x30c   :  { %v1571_v22 = vpop.xlane.xlu1 %1570 }
 0x30d   :  { %1637 = vst.msk [vmem:[%s2705_s9 + $0xf0] sm:$0xff] %vm1606_vm3, %v1604_v34  ;;  %v1605_v36 = vadd.f32 %v2534_v60, %v1571_v22 }
 0x30f   :  { %1638 = vst.msk [vmem:[%s2705_s9 + $0xf8] sm:$0xff] %vm1606_vm3, %v1605_v36 }

</bundles_post_ra>
